<compile_context>
chip_gen: v6e
topology: v6e:2x2x1
jax: 0.10.0
libtpu: 0.0.40
codegen_flags: <defaults>
</compile_context>

<pallas_src>
import functools

import jax
import jax.numpy as jnp
from jax import lax
from jax.experimental import pallas as pl
from jax.experimental.pallas import tpu as pltpu

_LANE = 128
_SUBLANE = 8


def _bilstm_multitask_kernel(
        x_ref,                                   # (T*B, D_i)   time-major, row = t*B + b
        wx_f_ref, wh_f_ref, b_f_ref,             # fwd LSTM fused gates: (D_i,4*D_h), (D_h,4*D_h), (1,4*D_h)
        wx_b_ref, wh_b_ref, b_b_ref,             # bwd LSTM, same shapes
        ws1f_ref, ws1b_ref, bs1_ref,             # linear_sentiment1 split halves: (D_h,D_o) x2, (1,D_o)
        ws2_ref, bs2_ref,                        # linear_sentiment2 (lane-padded): (D_o,C_pad), (1,C_pad)
        wp1f_ref, wp1b_ref, bp1_ref,             # linear_persona1 split halves: (D_h,D_o) x2, (1,D_o)
        wp2_ref, bp2_ref,                        # linear_persona2 (lane-padded): (D_o,P_pad), (1,P_pad)
        ysent_ref,                               # out: (T*B, C_pad)
        ypers_ref,                               # out: (B, P_pad)
        *, T, B, D_h):
    DH4 = 4 * D_h

    # ---- 1) Hoisted input projections: one big MXU matmul per direction, bias folded in. ----
    # Kept register-resident (no VMEM scratch round trip): at these shapes each slab is a few vregs.
    x = x_ref[...]
    xw_f = jnp.dot(x, wx_f_ref[...], preferred_element_type=jnp.float32) + b_f_ref[...]
    xw_b = jnp.dot(x, wx_b_ref[...], preferred_element_type=jnp.float32) + b_b_ref[...]

    wh_f = wh_f_ref[...]
    wh_b = wh_b_ref[...]

    # ---- 2) Gate activation setup (hoisted out of the loop). ----
    # PyTorch gate order i|f|g|o: sigmoid on i/f/o lanes, tanh on g lanes.  Using
    # tanh(x) = 2*sigmoid(2x) - 1 we run a SINGLE sigmoid pass over the fused 128-lane
    # block per matmul instead of sigmoid + tanh (halves EUP traffic on the serial chain).
    lane = lax.broadcasted_iota(jnp.int32, (B, DH4), 1)
    g_mask = (lane >= 2 * D_h) & (lane < 3 * D_h)
    pre_scale = jnp.where(g_mask, 2.0, 1.0).astype(jnp.float32)    # 2 on g-lanes, 1 elsewhere
    post_shift = jnp.where(g_mask, -1.0, 0.0).astype(jnp.float32)  # -1 on g-lanes, 0 elsewhere

    def activate(gates):
        s = jax.nn.sigmoid(gates * pre_scale)      # one EUP pass for the whole gate block
        return s * pre_scale + post_shift          # free VPU fixup: g-lanes -> 2*s - 1 = tanh

    def cell_update(act, c):
        i_g = act[:, 0:D_h]
        f_g = act[:, D_h:2 * D_h]
        g_g = act[:, 2 * D_h:3 * D_h]
        o_g = act[:, 3 * D_h:4 * D_h]
        c_new = f_g * c + i_g * g_g
        h_new = o_g * jnp.tanh(c_new)
        return h_new, c_new

    # ---- 3) Interleaved fwd/bwd recurrences, fused 128-wide gates, fully unrolled. ----
    # Python loop (T is a small static int); all row offsets are static slices of live values.
    hf = cf = hb = cb = jnp.zeros((B, D_h), jnp.float32)
    hf_by_t = [None] * T
    hb_by_t = [None] * T
    for s in range(T):
        rf = s * B                      # row offset of forward timestep s
        rb = (T - 1 - s) * B            # row offset of backward timestep T-1-s
        gates_f = xw_f[rf:rf + B] + jnp.dot(hf, wh_f, preferred_element_type=jnp.float32)
        gates_b = xw_b[rb:rb + B] + jnp.dot(hb, wh_b, preferred_element_type=jnp.float32)
        hf, cf = cell_update(activate(gates_f), cf)
        hb, cb = cell_update(activate(gates_b), cb)
        hf_by_t[s] = hf
        hb_by_t[T - 1 - s] = hb

    # ---- 4) Sentiment head over all T*B rows: register-resident packed hidden states, ----
    # ----    split-weight matmuls (no masked stores, no scratch readback).              ----
    h_f_all = jnp.concatenate(hf_by_t, axis=0)     # (T*B, D_h)  sublane-aligned (B % 8 == 0)
    h_b_all = jnp.concatenate(hb_by_t, axis=0)     # (T*B, D_h)
    z_s = jnp.maximum(
        jnp.dot(h_f_all, ws1f_ref[...], preferred_element_type=jnp.float32)
        + jnp.dot(h_b_all, ws1b_ref[...], preferred_element_type=jnp.float32)
        + bs1_ref[...], 0.0)
    # TODO(synk): nn.Dropout(p=0.5) is stochastic in train mode; implemented as eval-mode identity.
    ysent_ref[...] = (jnp.dot(z_s, ws2_ref[...], preferred_element_type=jnp.float32)
                      + bs2_ref[...])

    # ---- 5) Persona head on the final hidden states (h_n: fwd @ t=T-1, bwd @ t=0). ----
    z_p = jnp.maximum(
        jnp.dot(hf, wp1f_ref[...], preferred_element_type=jnp.float32)
        + jnp.dot(hb, wp1b_ref[...], preferred_element_type=jnp.float32)
        + bp1_ref[...], 0.0)
    ypers_ref[...] = jax.nn.sigmoid(
        jnp.dot(z_p, wp2_ref[...], preferred_element_type=jnp.float32) + bp2_ref[...])


def _pad_lanes(w, n=_LANE):
    pad = (-w.shape[-1]) % n
    if pad:
        w = jnp.pad(w, [(0, 0)] * (w.ndim - 1) + [(0, pad)])
    return w


@jax.jit
def bilstm_multitask_forward(x, params):
    """x: (B, T, D_i) float32 -> (y_persona (B, 5), y_sentiment (B, T, n_classes))."""
    B, T, D_i = x.shape
    D_h = params["wh_f"].shape[0]
    n_classes = params["bs2"].shape[-1]
    n_persona = params["bp2"].shape[-1]

    # Pad batch to a multiple of 8 sublanes: full (8,128) vreg tiles throughout, and the
    # in-kernel sublane-dim concatenate is tile-aligned.  Padded rows are sliced off below.
    B_pad = -(-B // _SUBLANE) * _SUBLANE
    if B_pad != B:
        x = jnp.pad(x, ((0, B_pad - B), (0, 0), (0, 0)))

    # Lane-dense classifier outputs: zero-pad output columns to 128, slice afterwards.
    ws2 = _pad_lanes(params["ws2"])
    bs2 = _pad_lanes(params["bs2"])
    wp2 = _pad_lanes(params["wp2"])
    bp2 = _pad_lanes(params["bp2"])
    C_pad = ws2.shape[-1]
    P_pad = wp2.shape[-1]

    # linear_sentiment1 split into fwd/bwd input halves (avoids any lane-dim concat in-kernel).
    ws1f = params["ws1"][:D_h]
    ws1b = params["ws1"][D_h:]

    # Time-major flattened rows (row = t*B_pad + b).
    x_tm = jnp.transpose(x, (1, 0, 2)).astype(jnp.float32).reshape(T * B_pad, D_i)

    args = (x_tm,
            params["wx_f"], params["wh_f"], params["b_f"],
            params["wx_b"], params["wh_b"], params["b_b"],
            ws1f, ws1b, params["bs1"], ws2, bs2,
            params["wp1f"], params["wp1b"], params["bp1"], wp2, bp2)

    vmem = pl.BlockSpec(memory_space=pltpu.MemorySpace.VMEM)

    y_sent_pad, y_pers_pad = pl.pallas_call(
        functools.partial(_bilstm_multitask_kernel, T=T, B=B_pad, D_h=D_h),
        out_shape=(jax.ShapeDtypeStruct((T * B_pad, C_pad), jnp.float32),
                   jax.ShapeDtypeStruct((B_pad, P_pad), jnp.float32)),
        in_specs=[vmem] * len(args),
        out_specs=(vmem, vmem),
    )(*args)

    y_sentiment = jnp.transpose(
        y_sent_pad[:, :n_classes].reshape(T, B_pad, n_classes), (1, 0, 2))[:B]
    y_persona = y_pers_pad[:B, :n_persona]
    return y_persona, y_sentiment


def init_params(key, D_i, D_h, D_o, n_classes=3, n_persona=5):
    """Deterministic synthetic init (PyTorch-style uniform(-1/sqrt(fan), 1/sqrt(fan))).

    LSTM gate weights are stored fused along the last axis in PyTorch order i|f|g|o,
    already transposed to input-major (i.e. weight_ih_l0.T / weight_hh_l0.T)."""
    ks = jax.random.split(key, 20)

    def u(k, shape, scale):
        return jax.random.uniform(k, shape, jnp.float32, -scale, scale)

    s_l = 1.0 / jnp.sqrt(D_h)
    s1 = 1.0 / jnp.sqrt(2 * D_h)
    s2 = 1.0 / jnp.sqrt(D_o)
    return {
        # forward-direction LSTM
        "wx_f": u(ks[0], (D_i, 4 * D_h), s_l),
        "wh_f": u(ks[1], (D_h, 4 * D_h), s_l),
        "b_f":  u(ks[2], (1, 4 * D_h), s_l) + u(ks[3], (1, 4 * D_h), s_l),   # b_ih + b_hh
        # backward-direction LSTM
        "wx_b": u(ks[4], (D_i, 4 * D_h), s_l),
        "wh_b": u(ks[5], (D_h, 4 * D_h), s_l),
        "b_b":  u(ks[6], (1, 4 * D_h), s_l) + u(ks[7], (1, 4 * D_h), s_l),
        # linear_sentiment1 / linear_sentiment2
        "ws1": u(ks[8], (2 * D_h, D_o), s1),
        "bs1": u(ks[9], (1, D_o), s1),
        "ws2": u(ks[10], (D_o, n_classes), s2),
        "bs2": u(ks[11], (1, n_classes), s2),
        # linear_persona1 (split into fwd/bwd halves of the 2*D_h input) / linear_persona2
        "wp1f": u(ks[12], (D_h, D_o), s1),
        "wp1b": u(ks[13], (D_h, D_o), s1),
        "bp1":  u(ks[14], (1, D_o), s1),
        "wp2":  u(ks[15], (D_o, n_persona), s2),
        "bp2":  u(ks[16], (1, n_persona), s2),
    }


def reference_forward(x, params):
    """Pure-JAX reference with identical math, for correctness checking."""
    B, T, D_i = x.shape
    D_h = params["wh_f"].shape[0]
    x_tm = jnp.transpose(x, (1, 0, 2)).astype(jnp.float32)     # (T, B, D_i)

    def run_dir(wx, wh, b, reverse):
        def step(carry, x_t):
            h, c = carry
            gates = x_t @ wx + h @ wh + b                      # (B, 4*D_h), order i|f|g|o
            i = jax.nn.sigmoid(gates[:, 0:D_h])
            f = jax.nn.sigmoid(gates[:, D_h:2 * D_h])
            g = jnp.tanh(gates[:, 2 * D_h:3 * D_h])
            o = jax.nn.sigmoid(gates[:, 3 * D_h:4 * D_h])
            c = f * c + i * g
            h = o * jnp.tanh(c)
            return (h, c), h

        xs = x_tm[::-1] if reverse else x_tm
        init = (jnp.zeros((B, D_h), jnp.float32), jnp.zeros((B, D_h), jnp.float32))
        (h_last, _), hs = lax.scan(step, init, xs)
        return (hs[::-1] if reverse else hs), h_last           # (T,B,D_h), (B,D_h)

    hf, hf_last = run_dir(params["wx_f"], params["wh_f"], params["b_f"], reverse=False)
    hb, hb_last = run_dir(params["wx_b"], params["wh_b"], params["b_b"], reverse=True)
    out = jnp.concatenate([hf, hb], axis=-1)                   # (T, B, 2*D_h)

    # sentiment head
    z_s = jnp.maximum(out @ params["ws1"] + params["bs1"], 0.0)
    y_sentiment = jnp.transpose(z_s @ params["ws2"] + params["bs2"], (1, 0, 2))

    # persona head (final hidden states of both directions)
    hc = jnp.concatenate([hf_last, hb_last], axis=-1)          # (B, 2*D_h)
    wp1 = jnp.concatenate([params["wp1f"], params["wp1b"]], axis=0)
    z_p = jnp.maximum(hc @ wp1 + params["bp1"], 0.0)
    y_persona = jax.nn.sigmoid(z_p @ params["wp2"] + params["bp2"])
    return y_persona, y_sentiment


if __name__ == "__main__":
    # Small shapes consistent with the module: batch=2, seq=8, D_i=16, D_h=32, D_o=32, n_classes=3.
    B, T, D_i, D_h, D_o, n_classes = 2, 8, 16, 32, 32, 3

    key = jax.random.PRNGKey(0)
    k_x, k_p = jax.random.split(key)
    x = jax.random.normal(k_x, (B, T, D_i), jnp.float32)
    params = init_params(k_p, D_i, D_h, D_o, n_classes)

    y_persona, y_sentiment = bilstm_multitask_forward(x, params)
    (y_persona, y_sentiment) = jax.block_until_ready((y_persona, y_sentiment))

    yp_ref, ys_ref = reference_forward(x, params)
    assert y_persona.shape == (B, 5), y_persona.shape
    assert y_sentiment.shape == (B, T, n_classes), y_sentiment.shape
    assert jnp.allclose(y_persona, yp_ref, atol=1e-4, rtol=1e-4), \
        float(jnp.max(jnp.abs(y_persona - yp_ref)))
    assert jnp.allclose(y_sentiment, ys_ref, atol=1e-4, rtol=1e-4), \
        float(jnp.max(jnp.abs(y_sentiment - ys_ref)))

    print("KERNEL_OK")
</pallas_src>

<mosaic_0001>
module attributes {stable_mosaic.version = 11 : i64} {
  func.func @_bilstm_multitask_kernel(%arg0: memref<64x16xf32, #tpu.memory_space<vmem>>, %arg1: memref<16x128xf32, #tpu.memory_space<vmem>>, %arg2: memref<32x128xf32, #tpu.memory_space<vmem>>, %arg3: memref<1x128xf32, #tpu.memory_space<vmem>>, %arg4: memref<16x128xf32, #tpu.memory_space<vmem>>, %arg5: memref<32x128xf32, #tpu.memory_space<vmem>>, %arg6: memref<1x128xf32, #tpu.memory_space<vmem>>, %arg7: memref<32x32xf32, #tpu.memory_space<vmem>>, %arg8: memref<32x32xf32, #tpu.memory_space<vmem>>, %arg9: memref<1x32xf32, #tpu.memory_space<vmem>>, %arg10: memref<32x128xf32, #tpu.memory_space<vmem>>, %arg11: memref<1x128xf32, #tpu.memory_space<vmem>>, %arg12: memref<32x32xf32, #tpu.memory_space<vmem>>, %arg13: memref<32x32xf32, #tpu.memory_space<vmem>>, %arg14: memref<1x32xf32, #tpu.memory_space<vmem>>, %arg15: memref<32x128xf32, #tpu.memory_space<vmem>>, %arg16: memref<1x128xf32, #tpu.memory_space<vmem>>, %arg17: memref<64x128xf32, #tpu.memory_space<vmem>>, %arg18: memref<8x128xf32, #tpu.memory_space<vmem>>) attributes {dimension_semantics = [], scalar_prefetch = 0 : i64, scratch_operands = 0 : i64, tpu.core_type = #tpu.core_type<tc>} {
    %c0 = arith.constant 0 : index
    %c0_0 = arith.constant 0 : index
    %0 = vector.load %arg0[%c0, %c0_0] : memref<64x16xf32, #tpu.memory_space<vmem>>, vector<64x16xf32>
    %c0_1 = arith.constant 0 : index
    %c0_2 = arith.constant 0 : index
    %1 = vector.load %arg1[%c0_1, %c0_2] : memref<16x128xf32, #tpu.memory_space<vmem>>, vector<16x128xf32>
    %cst = arith.constant dense<0.000000e+00> : vector<64x128xf32>
    %2 = tpu.matmul %0, %1, %cst {dimension_numbers = #tpu.dot_dimension_numbers<[1], [0], [0], [1], [0, 0, 1, 1], [], []>} : vector<64x16xf32>, vector<16x128xf32>, vector<64x128xf32> -> vector<64x128xf32>
    %c0_3 = arith.constant 0 : index
    %c0_4 = arith.constant 0 : index
    %3 = vector.load %arg3[%c0_3, %c0_4] : memref<1x128xf32, #tpu.memory_space<vmem>>, vector<1x128xf32>
    %4 = vector.broadcast %3 : vector<1x128xf32> to vector<64x128xf32>
    %5 = arith.addf %2, %4 : vector<64x128xf32>
    %c0_5 = arith.constant 0 : index
    %c0_6 = arith.constant 0 : index
    %6 = vector.load %arg4[%c0_5, %c0_6] : memref<16x128xf32, #tpu.memory_space<vmem>>, vector<16x128xf32>
    %cst_7 = arith.constant dense<0.000000e+00> : vector<64x128xf32>
    %7 = tpu.matmul %0, %6, %cst_7 {dimension_numbers = #tpu.dot_dimension_numbers<[1], [0], [0], [1], [0, 0, 1, 1], [], []>} : vector<64x16xf32>, vector<16x128xf32>, vector<64x128xf32> -> vector<64x128xf32>
    %c0_8 = arith.constant 0 : index
    %c0_9 = arith.constant 0 : index
    %8 = vector.load %arg6[%c0_8, %c0_9] : memref<1x128xf32, #tpu.memory_space<vmem>>, vector<1x128xf32>
    %9 = vector.broadcast %8 : vector<1x128xf32> to vector<64x128xf32>
    %10 = arith.addf %7, %9 : vector<64x128xf32>
    %c0_10 = arith.constant 0 : index
    %c0_11 = arith.constant 0 : index
    %11 = vector.load %arg2[%c0_10, %c0_11] : memref<32x128xf32, #tpu.memory_space<vmem>>, vector<32x128xf32>
    %c0_12 = arith.constant 0 : index
    %c0_13 = arith.constant 0 : index
    %12 = vector.load %arg5[%c0_12, %c0_13] : memref<32x128xf32, #tpu.memory_space<vmem>>, vector<32x128xf32>
    %13 = tpu.iota {dimensions = array<i32: 1>} : vector<8x128xi32>
    %c64_i32 = arith.constant 64 : i32
    %14 = vector.broadcast %c64_i32 : i32 to vector<8x128xi32>
    %15 = arith.cmpi sge, %13, %14 : vector<8x128xi32>
    %c96_i32 = arith.constant 96 : i32
    %16 = vector.broadcast %c96_i32 : i32 to vector<8x128xi32>
    %17 = arith.cmpi slt, %13, %16 : vector<8x128xi32>
    %18 = arith.andi %15, %17 : vector<8x128xi1>
    %cst_14 = arith.constant 2.000000e+00 : f32
    %cst_15 = arith.constant 1.000000e+00 : f32
    %19 = vector.broadcast %cst_14 : f32 to vector<8x128xf32>
    %20 = vector.broadcast %cst_15 : f32 to vector<8x128xf32>
    %21 = arith.select %18, %19, %20 : vector<8x128xi1>, vector<8x128xf32>
    %cst_16 = arith.constant -1.000000e+00 : f32
    %cst_17 = arith.constant 0.000000e+00 : f32
    %22 = vector.broadcast %cst_16 : f32 to vector<8x128xf32>
    %23 = vector.broadcast %cst_17 : f32 to vector<8x128xf32>
    %24 = arith.select %18, %22, %23 : vector<8x128xi1>, vector<8x128xf32>
    %cst_18 = arith.constant 0.000000e+00 : f32
    %25 = vector.broadcast %cst_18 : f32 to vector<8x32xf32>
    %26 = vector.extract_strided_slice %5 {offsets = [0, 0], sizes = [8, 128], strides = [1, 1]} : vector<64x128xf32> to vector<8x128xf32>
    %cst_19 = arith.constant dense<0.000000e+00> : vector<8x128xf32>
    %27 = tpu.matmul %25, %11, %cst_19 {dimension_numbers = #tpu.dot_dimension_numbers<[1], [0], [0], [1], [0, 0, 1, 1], [], []>} : vector<8x32xf32>, vector<32x128xf32>, vector<8x128xf32> -> vector<8x128xf32>
    %28 = arith.addf %26, %27 : vector<8x128xf32>
    %29 = vector.extract_strided_slice %10 {offsets = [56, 0], sizes = [8, 128], strides = [1, 1]} : vector<64x128xf32> to vector<8x128xf32>
    %cst_20 = arith.constant dense<0.000000e+00> : vector<8x128xf32>
    %30 = tpu.matmul %25, %12, %cst_20 {dimension_numbers = #tpu.dot_dimension_numbers<[1], [0], [0], [1], [0, 0, 1, 1], [], []>} : vector<8x32xf32>, vector<32x128xf32>, vector<8x128xf32> -> vector<8x128xf32>
    %31 = arith.addf %29, %30 : vector<8x128xf32>
    %32 = arith.mulf %28, %21 : vector<8x128xf32>
    %33 = arith.negf %32 : vector<8x128xf32>
    %34 = math.exp %33 : vector<8x128xf32>
    %cst_21 = arith.constant 1.000000e+00 : f32
    %35 = vector.broadcast %cst_21 : f32 to vector<8x128xf32>
    %36 = arith.addf %35, %34 : vector<8x128xf32>
    %37 = arith.divf %35, %36 : vector<8x128xf32>
    %38 = arith.mulf %37, %21 : vector<8x128xf32>
    %39 = arith.addf %38, %24 : vector<8x128xf32>
    %40 = vector.extract_strided_slice %39 {offsets = [0, 0], sizes = [8, 32], strides = [1, 1]} : vector<8x128xf32> to vector<8x32xf32>
    %41 = vector.extract_strided_slice %39 {offsets = [0, 32], sizes = [8, 32], strides = [1, 1]} : vector<8x128xf32> to vector<8x32xf32>
    %42 = vector.extract_strided_slice %39 {offsets = [0, 64], sizes = [8, 32], strides = [1, 1]} : vector<8x128xf32> to vector<8x32xf32>
    %43 = vector.extract_strided_slice %39 {offsets = [0, 96], sizes = [8, 32], strides = [1, 1]} : vector<8x128xf32> to vector<8x32xf32>
    %44 = arith.mulf %41, %25 : vector<8x32xf32>
    %45 = arith.mulf %40, %42 : vector<8x32xf32>
    %46 = arith.addf %44, %45 : vector<8x32xf32>
    %47 = math.tanh %46 : vector<8x32xf32>
    %48 = arith.mulf %43, %47 : vector<8x32xf32>
    %49 = arith.mulf %31, %21 : vector<8x128xf32>
    %50 = arith.negf %49 : vector<8x128xf32>
    %51 = math.exp %50 : vector<8x128xf32>
    %cst_22 = arith.constant 1.000000e+00 : f32
    %52 = vector.broadcast %cst_22 : f32 to vector<8x128xf32>
    %53 = arith.addf %52, %51 : vector<8x128xf32>
    %54 = arith.divf %52, %53 : vector<8x128xf32>
    %55 = arith.mulf %54, %21 : vector<8x128xf32>
    %56 = arith.addf %55, %24 : vector<8x128xf32>
    %57 = vector.extract_strided_slice %56 {offsets = [0, 0], sizes = [8, 32], strides = [1, 1]} : vector<8x128xf32> to vector<8x32xf32>
    %58 = vector.extract_strided_slice %56 {offsets = [0, 32], sizes = [8, 32], strides = [1, 1]} : vector<8x128xf32> to vector<8x32xf32>
    %59 = vector.extract_strided_slice %56 {offsets = [0, 64], sizes = [8, 32], strides = [1, 1]} : vector<8x128xf32> to vector<8x32xf32>
    %60 = vector.extract_strided_slice %56 {offsets = [0, 96], sizes = [8, 32], strides = [1, 1]} : vector<8x128xf32> to vector<8x32xf32>
    %61 = arith.mulf %58, %25 : vector<8x32xf32>
    %62 = arith.mulf %57, %59 : vector<8x32xf32>
    %63 = arith.addf %61, %62 : vector<8x32xf32>
    %64 = math.tanh %63 : vector<8x32xf32>
    %65 = arith.mulf %60, %64 : vector<8x32xf32>
    %66 = vector.extract_strided_slice %5 {offsets = [8, 0], sizes = [8, 128], strides = [1, 1]} : vector<64x128xf32> to vector<8x128xf32>
    %cst_23 = arith.constant dense<0.000000e+00> : vector<8x128xf32>
    %67 = tpu.matmul %48, %11, %cst_23 {dimension_numbers = #tpu.dot_dimension_numbers<[1], [0], [0], [1], [0, 0, 1, 1], [], []>} : vector<8x32xf32>, vector<32x128xf32>, vector<8x128xf32> -> vector<8x128xf32>
    %68 = arith.addf %66, %67 : vector<8x128xf32>
    %69 = vector.extract_strided_slice %10 {offsets = [48, 0], sizes = [8, 128], strides = [1, 1]} : vector<64x128xf32> to vector<8x128xf32>
    %cst_24 = arith.constant dense<0.000000e+00> : vector<8x128xf32>
    %70 = tpu.matmul %65, %12, %cst_24 {dimension_numbers = #tpu.dot_dimension_numbers<[1], [0], [0], [1], [0, 0, 1, 1], [], []>} : vector<8x32xf32>, vector<32x128xf32>, vector<8x128xf32> -> vector<8x128xf32>
    %71 = arith.addf %69, %70 : vector<8x128xf32>
    %72 = arith.mulf %68, %21 : vector<8x128xf32>
    %73 = arith.negf %72 : vector<8x128xf32>
    %74 = math.exp %73 : vector<8x128xf32>
    %cst_25 = arith.constant 1.000000e+00 : f32
    %75 = vector.broadcast %cst_25 : f32 to vector<8x128xf32>
    %76 = arith.addf %75, %74 : vector<8x128xf32>
    %77 = arith.divf %75, %76 : vector<8x128xf32>
    %78 = arith.mulf %77, %21 : vector<8x128xf32>
    %79 = arith.addf %78, %24 : vector<8x128xf32>
    %80 = vector.extract_strided_slice %79 {offsets = [0, 0], sizes = [8, 32], strides = [1, 1]} : vector<8x128xf32> to vector<8x32xf32>
    %81 = vector.extract_strided_slice %79 {offsets = [0, 32], sizes = [8, 32], strides = [1, 1]} : vector<8x128xf32> to vector<8x32xf32>
    %82 = vector.extract_strided_slice %79 {offsets = [0, 64], sizes = [8, 32], strides = [1, 1]} : vector<8x128xf32> to vector<8x32xf32>
    %83 = vector.extract_strided_slice %79 {offsets = [0, 96], sizes = [8, 32], strides = [1, 1]} : vector<8x128xf32> to vector<8x32xf32>
    %84 = arith.mulf %81, %46 : vector<8x32xf32>
    %85 = arith.mulf %80, %82 : vector<8x32xf32>
    %86 = arith.addf %84, %85 : vector<8x32xf32>
    %87 = math.tanh %86 : vector<8x32xf32>
    %88 = arith.mulf %83, %87 : vector<8x32xf32>
    %89 = arith.mulf %71, %21 : vector<8x128xf32>
    %90 = arith.negf %89 : vector<8x128xf32>
    %91 = math.exp %90 : vector<8x128xf32>
    %cst_26 = arith.constant 1.000000e+00 : f32
    %92 = vector.broadcast %cst_26 : f32 to vector<8x128xf32>
    %93 = arith.addf %92, %91 : vector<8x128xf32>
    %94 = arith.divf %92, %93 : vector<8x128xf32>
    %95 = arith.mulf %94, %21 : vector<8x128xf32>
    %96 = arith.addf %95, %24 : vector<8x128xf32>
    %97 = vector.extract_strided_slice %96 {offsets = [0, 0], sizes = [8, 32], strides = [1, 1]} : vector<8x128xf32> to vector<8x32xf32>
    %98 = vector.extract_strided_slice %96 {offsets = [0, 32], sizes = [8, 32], strides = [1, 1]} : vector<8x128xf32> to vector<8x32xf32>
    %99 = vector.extract_strided_slice %96 {offsets = [0, 64], sizes = [8, 32], strides = [1, 1]} : vector<8x128xf32> to vector<8x32xf32>
    %100 = vector.extract_strided_slice %96 {offsets = [0, 96], sizes = [8, 32], strides = [1, 1]} : vector<8x128xf32> to vector<8x32xf32>
    %101 = arith.mulf %98, %63 : vector<8x32xf32>
    %102 = arith.mulf %97, %99 : vector<8x32xf32>
    %103 = arith.addf %101, %102 : vector<8x32xf32>
    %104 = math.tanh %103 : vector<8x32xf32>
    %105 = arith.mulf %100, %104 : vector<8x32xf32>
    %106 = vector.extract_strided_slice %5 {offsets = [16, 0], sizes = [8, 128], strides = [1, 1]} : vector<64x128xf32> to vector<8x128xf32>
    %cst_27 = arith.constant dense<0.000000e+00> : vector<8x128xf32>
    %107 = tpu.matmul %88, %11, %cst_27 {dimension_numbers = #tpu.dot_dimension_numbers<[1], [0], [0], [1], [0, 0, 1, 1], [], []>} : vector<8x32xf32>, vector<32x128xf32>, vector<8x128xf32> -> vector<8x128xf32>
    %108 = arith.addf %106, %107 : vector<8x128xf32>
    %109 = vector.extract_strided_slice %10 {offsets = [40, 0], sizes = [8, 128], strides = [1, 1]} : vector<64x128xf32> to vector<8x128xf32>
    %cst_28 = arith.constant dense<0.000000e+00> : vector<8x128xf32>
    %110 = tpu.matmul %105, %12, %cst_28 {dimension_numbers = #tpu.dot_dimension_numbers<[1], [0], [0], [1], [0, 0, 1, 1], [], []>} : vector<8x32xf32>, vector<32x128xf32>, vector<8x128xf32> -> vector<8x128xf32>
    %111 = arith.addf %109, %110 : vector<8x128xf32>
    %112 = arith.mulf %108, %21 : vector<8x128xf32>
    %113 = arith.negf %112 : vector<8x128xf32>
    %114 = math.exp %113 : vector<8x128xf32>
    %cst_29 = arith.constant 1.000000e+00 : f32
    %115 = vector.broadcast %cst_29 : f32 to vector<8x128xf32>
    %116 = arith.addf %115, %114 : vector<8x128xf32>
    %117 = arith.divf %115, %116 : vector<8x128xf32>
    %118 = arith.mulf %117, %21 : vector<8x128xf32>
    %119 = arith.addf %118, %24 : vector<8x128xf32>
    %120 = vector.extract_strided_slice %119 {offsets = [0, 0], sizes = [8, 32], strides = [1, 1]} : vector<8x128xf32> to vector<8x32xf32>
    %121 = vector.extract_strided_slice %119 {offsets = [0, 32], sizes = [8, 32], strides = [1, 1]} : vector<8x128xf32> to vector<8x32xf32>
    %122 = vector.extract_strided_slice %119 {offsets = [0, 64], sizes = [8, 32], strides = [1, 1]} : vector<8x128xf32> to vector<8x32xf32>
    %123 = vector.extract_strided_slice %119 {offsets = [0, 96], sizes = [8, 32], strides = [1, 1]} : vector<8x128xf32> to vector<8x32xf32>
    %124 = arith.mulf %121, %86 : vector<8x32xf32>
    %125 = arith.mulf %120, %122 : vector<8x32xf32>
    %126 = arith.addf %124, %125 : vector<8x32xf32>
    %127 = math.tanh %126 : vector<8x32xf32>
    %128 = arith.mulf %123, %127 : vector<8x32xf32>
    %129 = arith.mulf %111, %21 : vector<8x128xf32>
    %130 = arith.negf %129 : vector<8x128xf32>
    %131 = math.exp %130 : vector<8x128xf32>
    %cst_30 = arith.constant 1.000000e+00 : f32
    %132 = vector.broadcast %cst_30 : f32 to vector<8x128xf32>
    %133 = arith.addf %132, %131 : vector<8x128xf32>
    %134 = arith.divf %132, %133 : vector<8x128xf32>
    %135 = arith.mulf %134, %21 : vector<8x128xf32>
    %136 = arith.addf %135, %24 : vector<8x128xf32>
    %137 = vector.extract_strided_slice %136 {offsets = [0, 0], sizes = [8, 32], strides = [1, 1]} : vector<8x128xf32> to vector<8x32xf32>
    %138 = vector.extract_strided_slice %136 {offsets = [0, 32], sizes = [8, 32], strides = [1, 1]} : vector<8x128xf32> to vector<8x32xf32>
    %139 = vector.extract_strided_slice %136 {offsets = [0, 64], sizes = [8, 32], strides = [1, 1]} : vector<8x128xf32> to vector<8x32xf32>
    %140 = vector.extract_strided_slice %136 {offsets = [0, 96], sizes = [8, 32], strides = [1, 1]} : vector<8x128xf32> to vector<8x32xf32>
    %141 = arith.mulf %138, %103 : vector<8x32xf32>
    %142 = arith.mulf %137, %139 : vector<8x32xf32>
    %143 = arith.addf %141, %142 : vector<8x32xf32>
    %144 = math.tanh %143 : vector<8x32xf32>
    %145 = arith.mulf %140, %144 : vector<8x32xf32>
    %146 = vector.extract_strided_slice %5 {offsets = [24, 0], sizes = [8, 128], strides = [1, 1]} : vector<64x128xf32> to vector<8x128xf32>
    %cst_31 = arith.constant dense<0.000000e+00> : vector<8x128xf32>
    %147 = tpu.matmul %128, %11, %cst_31 {dimension_numbers = #tpu.dot_dimension_numbers<[1], [0], [0], [1], [0, 0, 1, 1], [], []>} : vector<8x32xf32>, vector<32x128xf32>, vector<8x128xf32> -> vector<8x128xf32>
    %148 = arith.addf %146, %147 : vector<8x128xf32>
    %149 = vector.extract_strided_slice %10 {offsets = [32, 0], sizes = [8, 128], strides = [1, 1]} : vector<64x128xf32> to vector<8x128xf32>
    %cst_32 = arith.constant dense<0.000000e+00> : vector<8x128xf32>
    %150 = tpu.matmul %145, %12, %cst_32 {dimension_numbers = #tpu.dot_dimension_numbers<[1], [0], [0], [1], [0, 0, 1, 1], [], []>} : vector<8x32xf32>, vector<32x128xf32>, vector<8x128xf32> -> vector<8x128xf32>
    %151 = arith.addf %149, %150 : vector<8x128xf32>
    %152 = arith.mulf %148, %21 : vector<8x128xf32>
    %153 = arith.negf %152 : vector<8x128xf32>
    %154 = math.exp %153 : vector<8x128xf32>
    %cst_33 = arith.constant 1.000000e+00 : f32
    %155 = vector.broadcast %cst_33 : f32 to vector<8x128xf32>
    %156 = arith.addf %155, %154 : vector<8x128xf32>
    %157 = arith.divf %155, %156 : vector<8x128xf32>
    %158 = arith.mulf %157, %21 : vector<8x128xf32>
    %159 = arith.addf %158, %24 : vector<8x128xf32>
    %160 = vector.extract_strided_slice %159 {offsets = [0, 0], sizes = [8, 32], strides = [1, 1]} : vector<8x128xf32> to vector<8x32xf32>
    %161 = vector.extract_strided_slice %159 {offsets = [0, 32], sizes = [8, 32], strides = [1, 1]} : vector<8x128xf32> to vector<8x32xf32>
    %162 = vector.extract_strided_slice %159 {offsets = [0, 64], sizes = [8, 32], strides = [1, 1]} : vector<8x128xf32> to vector<8x32xf32>
    %163 = vector.extract_strided_slice %159 {offsets = [0, 96], sizes = [8, 32], strides = [1, 1]} : vector<8x128xf32> to vector<8x32xf32>
    %164 = arith.mulf %161, %126 : vector<8x32xf32>
    %165 = arith.mulf %160, %162 : vector<8x32xf32>
    %166 = arith.addf %164, %165 : vector<8x32xf32>
    %167 = math.tanh %166 : vector<8x32xf32>
    %168 = arith.mulf %163, %167 : vector<8x32xf32>
    %169 = arith.mulf %151, %21 : vector<8x128xf32>
    %170 = arith.negf %169 : vector<8x128xf32>
    %171 = math.exp %170 : vector<8x128xf32>
    %cst_34 = arith.constant 1.000000e+00 : f32
    %172 = vector.broadcast %cst_34 : f32 to vector<8x128xf32>
    %173 = arith.addf %172, %171 : vector<8x128xf32>
    %174 = arith.divf %172, %173 : vector<8x128xf32>
    %175 = arith.mulf %174, %21 : vector<8x128xf32>
    %176 = arith.addf %175, %24 : vector<8x128xf32>
    %177 = vector.extract_strided_slice %176 {offsets = [0, 0], sizes = [8, 32], strides = [1, 1]} : vector<8x128xf32> to vector<8x32xf32>
    %178 = vector.extract_strided_slice %176 {offsets = [0, 32], sizes = [8, 32], strides = [1, 1]} : vector<8x128xf32> to vector<8x32xf32>
    %179 = vector.extract_strided_slice %176 {offsets = [0, 64], sizes = [8, 32], strides = [1, 1]} : vector<8x128xf32> to vector<8x32xf32>
    %180 = vector.extract_strided_slice %176 {offsets = [0, 96], sizes = [8, 32], strides = [1, 1]} : vector<8x128xf32> to vector<8x32xf32>
    %181 = arith.mulf %178, %143 : vector<8x32xf32>
    %182 = arith.mulf %177, %179 : vector<8x32xf32>
    %183 = arith.addf %181, %182 : vector<8x32xf32>
    %184 = math.tanh %183 : vector<8x32xf32>
    %185 = arith.mulf %180, %184 : vector<8x32xf32>
    %186 = vector.extract_strided_slice %5 {offsets = [32, 0], sizes = [8, 128], strides = [1, 1]} : vector<64x128xf32> to vector<8x128xf32>
    %cst_35 = arith.constant dense<0.000000e+00> : vector<8x128xf32>
    %187 = tpu.matmul %168, %11, %cst_35 {dimension_numbers = #tpu.dot_dimension_numbers<[1], [0], [0], [1], [0, 0, 1, 1], [], []>} : vector<8x32xf32>, vector<32x128xf32>, vector<8x128xf32> -> vector<8x128xf32>
    %188 = arith.addf %186, %187 : vector<8x128xf32>
    %189 = vector.extract_strided_slice %10 {offsets = [24, 0], sizes = [8, 128], strides = [1, 1]} : vector<64x128xf32> to vector<8x128xf32>
    %cst_36 = arith.constant dense<0.000000e+00> : vector<8x128xf32>
    %190 = tpu.matmul %185, %12, %cst_36 {dimension_numbers = #tpu.dot_dimension_numbers<[1], [0], [0], [1], [0, 0, 1, 1], [], []>} : vector<8x32xf32>, vector<32x128xf32>, vector<8x128xf32> -> vector<8x128xf32>
    %191 = arith.addf %189, %190 : vector<8x128xf32>
    %192 = arith.mulf %188, %21 : vector<8x128xf32>
    %193 = arith.negf %192 : vector<8x128xf32>
    %194 = math.exp %193 : vector<8x128xf32>
    %cst_37 = arith.constant 1.000000e+00 : f32
    %195 = vector.broadcast %cst_37 : f32 to vector<8x128xf32>
    %196 = arith.addf %195, %194 : vector<8x128xf32>
    %197 = arith.divf %195, %196 : vector<8x128xf32>
    %198 = arith.mulf %197, %21 : vector<8x128xf32>
    %199 = arith.addf %198, %24 : vector<8x128xf32>
    %200 = vector.extract_strided_slice %199 {offsets = [0, 0], sizes = [8, 32], strides = [1, 1]} : vector<8x128xf32> to vector<8x32xf32>
    %201 = vector.extract_strided_slice %199 {offsets = [0, 32], sizes = [8, 32], strides = [1, 1]} : vector<8x128xf32> to vector<8x32xf32>
    %202 = vector.extract_strided_slice %199 {offsets = [0, 64], sizes = [8, 32], strides = [1, 1]} : vector<8x128xf32> to vector<8x32xf32>
    %203 = vector.extract_strided_slice %199 {offsets = [0, 96], sizes = [8, 32], strides = [1, 1]} : vector<8x128xf32> to vector<8x32xf32>
    %204 = arith.mulf %201, %166 : vector<8x32xf32>
    %205 = arith.mulf %200, %202 : vector<8x32xf32>
    %206 = arith.addf %204, %205 : vector<8x32xf32>
    %207 = math.tanh %206 : vector<8x32xf32>
    %208 = arith.mulf %203, %207 : vector<8x32xf32>
    %209 = arith.mulf %191, %21 : vector<8x128xf32>
    %210 = arith.negf %209 : vector<8x128xf32>
    %211 = math.exp %210 : vector<8x128xf32>
    %cst_38 = arith.constant 1.000000e+00 : f32
    %212 = vector.broadcast %cst_38 : f32 to vector<8x128xf32>
    %213 = arith.addf %212, %211 : vector<8x128xf32>
    %214 = arith.divf %212, %213 : vector<8x128xf32>
    %215 = arith.mulf %214, %21 : vector<8x128xf32>
    %216 = arith.addf %215, %24 : vector<8x128xf32>
    %217 = vector.extract_strided_slice %216 {offsets = [0, 0], sizes = [8, 32], strides = [1, 1]} : vector<8x128xf32> to vector<8x32xf32>
    %218 = vector.extract_strided_slice %216 {offsets = [0, 32], sizes = [8, 32], strides = [1, 1]} : vector<8x128xf32> to vector<8x32xf32>
    %219 = vector.extract_strided_slice %216 {offsets = [0, 64], sizes = [8, 32], strides = [1, 1]} : vector<8x128xf32> to vector<8x32xf32>
    %220 = vector.extract_strided_slice %216 {offsets = [0, 96], sizes = [8, 32], strides = [1, 1]} : vector<8x128xf32> to vector<8x32xf32>
    %221 = arith.mulf %218, %183 : vector<8x32xf32>
    %222 = arith.mulf %217, %219 : vector<8x32xf32>
    %223 = arith.addf %221, %222 : vector<8x32xf32>
    %224 = math.tanh %223 : vector<8x32xf32>
    %225 = arith.mulf %220, %224 : vector<8x32xf32>
    %226 = vector.extract_strided_slice %5 {offsets = [40, 0], sizes = [8, 128], strides = [1, 1]} : vector<64x128xf32> to vector<8x128xf32>
    %cst_39 = arith.constant dense<0.000000e+00> : vector<8x128xf32>
    %227 = tpu.matmul %208, %11, %cst_39 {dimension_numbers = #tpu.dot_dimension_numbers<[1], [0], [0], [1], [0, 0, 1, 1], [], []>} : vector<8x32xf32>, vector<32x128xf32>, vector<8x128xf32> -> vector<8x128xf32>
    %228 = arith.addf %226, %227 : vector<8x128xf32>
    %229 = vector.extract_strided_slice %10 {offsets = [16, 0], sizes = [8, 128], strides = [1, 1]} : vector<64x128xf32> to vector<8x128xf32>
    %cst_40 = arith.constant dense<0.000000e+00> : vector<8x128xf32>
    %230 = tpu.matmul %225, %12, %cst_40 {dimension_numbers = #tpu.dot_dimension_numbers<[1], [0], [0], [1], [0, 0, 1, 1], [], []>} : vector<8x32xf32>, vector<32x128xf32>, vector<8x128xf32> -> vector<8x128xf32>
    %231 = arith.addf %229, %230 : vector<8x128xf32>
    %232 = arith.mulf %228, %21 : vector<8x128xf32>
    %233 = arith.negf %232 : vector<8x128xf32>
    %234 = math.exp %233 : vector<8x128xf32>
    %cst_41 = arith.constant 1.000000e+00 : f32
    %235 = vector.broadcast %cst_41 : f32 to vector<8x128xf32>
    %236 = arith.addf %235, %234 : vector<8x128xf32>
    %237 = arith.divf %235, %236 : vector<8x128xf32>
    %238 = arith.mulf %237, %21 : vector<8x128xf32>
    %239 = arith.addf %238, %24 : vector<8x128xf32>
    %240 = vector.extract_strided_slice %239 {offsets = [0, 0], sizes = [8, 32], strides = [1, 1]} : vector<8x128xf32> to vector<8x32xf32>
    %241 = vector.extract_strided_slice %239 {offsets = [0, 32], sizes = [8, 32], strides = [1, 1]} : vector<8x128xf32> to vector<8x32xf32>
    %242 = vector.extract_strided_slice %239 {offsets = [0, 64], sizes = [8, 32], strides = [1, 1]} : vector<8x128xf32> to vector<8x32xf32>
    %243 = vector.extract_strided_slice %239 {offsets = [0, 96], sizes = [8, 32], strides = [1, 1]} : vector<8x128xf32> to vector<8x32xf32>
    %244 = arith.mulf %241, %206 : vector<8x32xf32>
    %245 = arith.mulf %240, %242 : vector<8x32xf32>
    %246 = arith.addf %244, %245 : vector<8x32xf32>
    %247 = math.tanh %246 : vector<8x32xf32>
    %248 = arith.mulf %243, %247 : vector<8x32xf32>
    %249 = arith.mulf %231, %21 : vector<8x128xf32>
    %250 = arith.negf %249 : vector<8x128xf32>
    %251 = math.exp %250 : vector<8x128xf32>
    %cst_42 = arith.constant 1.000000e+00 : f32
    %252 = vector.broadcast %cst_42 : f32 to vector<8x128xf32>
    %253 = arith.addf %252, %251 : vector<8x128xf32>
    %254 = arith.divf %252, %253 : vector<8x128xf32>
    %255 = arith.mulf %254, %21 : vector<8x128xf32>
    %256 = arith.addf %255, %24 : vector<8x128xf32>
    %257 = vector.extract_strided_slice %256 {offsets = [0, 0], sizes = [8, 32], strides = [1, 1]} : vector<8x128xf32> to vector<8x32xf32>
    %258 = vector.extract_strided_slice %256 {offsets = [0, 32], sizes = [8, 32], strides = [1, 1]} : vector<8x128xf32> to vector<8x32xf32>
    %259 = vector.extract_strided_slice %256 {offsets = [0, 64], sizes = [8, 32], strides = [1, 1]} : vector<8x128xf32> to vector<8x32xf32>
    %260 = vector.extract_strided_slice %256 {offsets = [0, 96], sizes = [8, 32], strides = [1, 1]} : vector<8x128xf32> to vector<8x32xf32>
    %261 = arith.mulf %258, %223 : vector<8x32xf32>
    %262 = arith.mulf %257, %259 : vector<8x32xf32>
    %263 = arith.addf %261, %262 : vector<8x32xf32>
    %264 = math.tanh %263 : vector<8x32xf32>
    %265 = arith.mulf %260, %264 : vector<8x32xf32>
    %266 = vector.extract_strided_slice %5 {offsets = [48, 0], sizes = [8, 128], strides = [1, 1]} : vector<64x128xf32> to vector<8x128xf32>
    %cst_43 = arith.constant dense<0.000000e+00> : vector<8x128xf32>
    %267 = tpu.matmul %248, %11, %cst_43 {dimension_numbers = #tpu.dot_dimension_numbers<[1], [0], [0], [1], [0, 0, 1, 1], [], []>} : vector<8x32xf32>, vector<32x128xf32>, vector<8x128xf32> -> vector<8x128xf32>
    %268 = arith.addf %266, %267 : vector<8x128xf32>
    %269 = vector.extract_strided_slice %10 {offsets = [8, 0], sizes = [8, 128], strides = [1, 1]} : vector<64x128xf32> to vector<8x128xf32>
    %cst_44 = arith.constant dense<0.000000e+00> : vector<8x128xf32>
    %270 = tpu.matmul %265, %12, %cst_44 {dimension_numbers = #tpu.dot_dimension_numbers<[1], [0], [0], [1], [0, 0, 1, 1], [], []>} : vector<8x32xf32>, vector<32x128xf32>, vector<8x128xf32> -> vector<8x128xf32>
    %271 = arith.addf %269, %270 : vector<8x128xf32>
    %272 = arith.mulf %268, %21 : vector<8x128xf32>
    %273 = arith.negf %272 : vector<8x128xf32>
    %274 = math.exp %273 : vector<8x128xf32>
    %cst_45 = arith.constant 1.000000e+00 : f32
    %275 = vector.broadcast %cst_45 : f32 to vector<8x128xf32>
    %276 = arith.addf %275, %274 : vector<8x128xf32>
    %277 = arith.divf %275, %276 : vector<8x128xf32>
    %278 = arith.mulf %277, %21 : vector<8x128xf32>
    %279 = arith.addf %278, %24 : vector<8x128xf32>
    %280 = vector.extract_strided_slice %279 {offsets = [0, 0], sizes = [8, 32], strides = [1, 1]} : vector<8x128xf32> to vector<8x32xf32>
    %281 = vector.extract_strided_slice %279 {offsets = [0, 32], sizes = [8, 32], strides = [1, 1]} : vector<8x128xf32> to vector<8x32xf32>
    %282 = vector.extract_strided_slice %279 {offsets = [0, 64], sizes = [8, 32], strides = [1, 1]} : vector<8x128xf32> to vector<8x32xf32>
    %283 = vector.extract_strided_slice %279 {offsets = [0, 96], sizes = [8, 32], strides = [1, 1]} : vector<8x128xf32> to vector<8x32xf32>
    %284 = arith.mulf %281, %246 : vector<8x32xf32>
    %285 = arith.mulf %280, %282 : vector<8x32xf32>
    %286 = arith.addf %284, %285 : vector<8x32xf32>
    %287 = math.tanh %286 : vector<8x32xf32>
    %288 = arith.mulf %283, %287 : vector<8x32xf32>
    %289 = arith.mulf %271, %21 : vector<8x128xf32>
    %290 = arith.negf %289 : vector<8x128xf32>
    %291 = math.exp %290 : vector<8x128xf32>
    %cst_46 = arith.constant 1.000000e+00 : f32
    %292 = vector.broadcast %cst_46 : f32 to vector<8x128xf32>
    %293 = arith.addf %292, %291 : vector<8x128xf32>
    %294 = arith.divf %292, %293 : vector<8x128xf32>
    %295 = arith.mulf %294, %21 : vector<8x128xf32>
    %296 = arith.addf %295, %24 : vector<8x128xf32>
    %297 = vector.extract_strided_slice %296 {offsets = [0, 0], sizes = [8, 32], strides = [1, 1]} : vector<8x128xf32> to vector<8x32xf32>
    %298 = vector.extract_strided_slice %296 {offsets = [0, 32], sizes = [8, 32], strides = [1, 1]} : vector<8x128xf32> to vector<8x32xf32>
    %299 = vector.extract_strided_slice %296 {offsets = [0, 64], sizes = [8, 32], strides = [1, 1]} : vector<8x128xf32> to vector<8x32xf32>
    %300 = vector.extract_strided_slice %296 {offsets = [0, 96], sizes = [8, 32], strides = [1, 1]} : vector<8x128xf32> to vector<8x32xf32>
    %301 = arith.mulf %298, %263 : vector<8x32xf32>
    %302 = arith.mulf %297, %299 : vector<8x32xf32>
    %303 = arith.addf %301, %302 : vector<8x32xf32>
    %304 = math.tanh %303 : vector<8x32xf32>
    %305 = arith.mulf %300, %304 : vector<8x32xf32>
    %306 = vector.extract_strided_slice %5 {offsets = [56, 0], sizes = [8, 128], strides = [1, 1]} : vector<64x128xf32> to vector<8x128xf32>
    %cst_47 = arith.constant dense<0.000000e+00> : vector<8x128xf32>
    %307 = tpu.matmul %288, %11, %cst_47 {dimension_numbers = #tpu.dot_dimension_numbers<[1], [0], [0], [1], [0, 0, 1, 1], [], []>} : vector<8x32xf32>, vector<32x128xf32>, vector<8x128xf32> -> vector<8x128xf32>
    %308 = arith.addf %306, %307 : vector<8x128xf32>
    %309 = vector.extract_strided_slice %10 {offsets = [0, 0], sizes = [8, 128], strides = [1, 1]} : vector<64x128xf32> to vector<8x128xf32>
    %cst_48 = arith.constant dense<0.000000e+00> : vector<8x128xf32>
    %310 = tpu.matmul %305, %12, %cst_48 {dimension_numbers = #tpu.dot_dimension_numbers<[1], [0], [0], [1], [0, 0, 1, 1], [], []>} : vector<8x32xf32>, vector<32x128xf32>, vector<8x128xf32> -> vector<8x128xf32>
    %311 = arith.addf %309, %310 : vector<8x128xf32>
    %312 = arith.mulf %308, %21 : vector<8x128xf32>
    %313 = arith.negf %312 : vector<8x128xf32>
    %314 = math.exp %313 : vector<8x128xf32>
    %cst_49 = arith.constant 1.000000e+00 : f32
    %315 = vector.broadcast %cst_49 : f32 to vector<8x128xf32>
    %316 = arith.addf %315, %314 : vector<8x128xf32>
    %317 = arith.divf %315, %316 : vector<8x128xf32>
    %318 = arith.mulf %317, %21 : vector<8x128xf32>
    %319 = arith.addf %318, %24 : vector<8x128xf32>
    %320 = vector.extract_strided_slice %319 {offsets = [0, 0], sizes = [8, 32], strides = [1, 1]} : vector<8x128xf32> to vector<8x32xf32>
    %321 = vector.extract_strided_slice %319 {offsets = [0, 32], sizes = [8, 32], strides = [1, 1]} : vector<8x128xf32> to vector<8x32xf32>
    %322 = vector.extract_strided_slice %319 {offsets = [0, 64], sizes = [8, 32], strides = [1, 1]} : vector<8x128xf32> to vector<8x32xf32>
    %323 = vector.extract_strided_slice %319 {offsets = [0, 96], sizes = [8, 32], strides = [1, 1]} : vector<8x128xf32> to vector<8x32xf32>
    %324 = arith.mulf %321, %286 : vector<8x32xf32>
    %325 = arith.mulf %320, %322 : vector<8x32xf32>
    %326 = arith.addf %324, %325 : vector<8x32xf32>
    %327 = math.tanh %326 : vector<8x32xf32>
    %328 = arith.mulf %323, %327 : vector<8x32xf32>
    %329 = arith.mulf %311, %21 : vector<8x128xf32>
    %330 = arith.negf %329 : vector<8x128xf32>
    %331 = math.exp %330 : vector<8x128xf32>
    %cst_50 = arith.constant 1.000000e+00 : f32
    %332 = vector.broadcast %cst_50 : f32 to vector<8x128xf32>
    %333 = arith.addf %332, %331 : vector<8x128xf32>
    %334 = arith.divf %332, %333 : vector<8x128xf32>
    %335 = arith.mulf %334, %21 : vector<8x128xf32>
    %336 = arith.addf %335, %24 : vector<8x128xf32>
    %337 = vector.extract_strided_slice %336 {offsets = [0, 0], sizes = [8, 32], strides = [1, 1]} : vector<8x128xf32> to vector<8x32xf32>
    %338 = vector.extract_strided_slice %336 {offsets = [0, 32], sizes = [8, 32], strides = [1, 1]} : vector<8x128xf32> to vector<8x32xf32>
    %339 = vector.extract_strided_slice %336 {offsets = [0, 64], sizes = [8, 32], strides = [1, 1]} : vector<8x128xf32> to vector<8x32xf32>
    %340 = vector.extract_strided_slice %336 {offsets = [0, 96], sizes = [8, 32], strides = [1, 1]} : vector<8x128xf32> to vector<8x32xf32>
    %341 = arith.mulf %338, %303 : vector<8x32xf32>
    %342 = arith.mulf %337, %339 : vector<8x32xf32>
    %343 = arith.addf %341, %342 : vector<8x32xf32>
    %344 = math.tanh %343 : vector<8x32xf32>
    %345 = arith.mulf %340, %344 : vector<8x32xf32>
    %346 = tpu.concatenate %48, %88, %128, %168, %208, %248, %288, %328 in 0 : vector<8x32xf32>, vector<8x32xf32>, vector<8x32xf32>, vector<8x32xf32>, vector<8x32xf32>, vector<8x32xf32>, vector<8x32xf32>, vector<8x32xf32> -> vector<64x32xf32>
    %347 = tpu.concatenate %345, %305, %265, %225, %185, %145, %105, %65 in 0 : vector<8x32xf32>, vector<8x32xf32>, vector<8x32xf32>, vector<8x32xf32>, vector<8x32xf32>, vector<8x32xf32>, vector<8x32xf32>, vector<8x32xf32> -> vector<64x32xf32>
    %c0_51 = arith.constant 0 : index
    %c0_52 = arith.constant 0 : index
    %348 = vector.load %arg7[%c0_51, %c0_52] : memref<32x32xf32, #tpu.memory_space<vmem>>, vector<32x32xf32>
    %cst_53 = arith.constant dense<0.000000e+00> : vector<64x32xf32>
    %349 = tpu.matmul %346, %348, %cst_53 {dimension_numbers = #tpu.dot_dimension_numbers<[1], [0], [0], [1], [0, 0, 1, 1], [], []>} : vector<64x32xf32>, vector<32x32xf32>, vector<64x32xf32> -> vector<64x32xf32>
    %c0_54 = arith.constant 0 : index
    %c0_55 = arith.constant 0 : index
    %350 = vector.load %arg8[%c0_54, %c0_55] : memref<32x32xf32, #tpu.memory_space<vmem>>, vector<32x32xf32>
    %cst_56 = arith.constant dense<0.000000e+00> : vector<64x32xf32>
    %351 = tpu.matmul %347, %350, %cst_56 {dimension_numbers = #tpu.dot_dimension_numbers<[1], [0], [0], [1], [0, 0, 1, 1], [], []>} : vector<64x32xf32>, vector<32x32xf32>, vector<64x32xf32> -> vector<64x32xf32>
    %352 = arith.addf %349, %351 : vector<64x32xf32>
    %c0_57 = arith.constant 0 : index
    %c0_58 = arith.constant 0 : index
    %353 = vector.load %arg9[%c0_57, %c0_58] : memref<1x32xf32, #tpu.memory_space<vmem>>, vector<1x32xf32>
    %354 = vector.broadcast %353 : vector<1x32xf32> to vector<64x32xf32>
    %355 = arith.addf %352, %354 : vector<64x32xf32>
    %cst_59 = arith.constant 0.000000e+00 : f32
    %356 = vector.broadcast %cst_59 : f32 to vector<64x32xf32>
    %357 = arith.maximumf %355, %356 : vector<64x32xf32>
    %c0_60 = arith.constant 0 : index
    %c0_61 = arith.constant 0 : index
    %358 = vector.load %arg10[%c0_60, %c0_61] : memref<32x128xf32, #tpu.memory_space<vmem>>, vector<32x128xf32>
    %cst_62 = arith.constant dense<0.000000e+00> : vector<64x128xf32>
    %359 = tpu.matmul %357, %358, %cst_62 {dimension_numbers = #tpu.dot_dimension_numbers<[1], [0], [0], [1], [0, 0, 1, 1], [], []>} : vector<64x32xf32>, vector<32x128xf32>, vector<64x128xf32> -> vector<64x128xf32>
    %c0_63 = arith.constant 0 : index
    %c0_64 = arith.constant 0 : index
    %360 = vector.load %arg11[%c0_63, %c0_64] : memref<1x128xf32, #tpu.memory_space<vmem>>, vector<1x128xf32>
    %361 = vector.broadcast %360 : vector<1x128xf32> to vector<64x128xf32>
    %362 = arith.addf %359, %361 : vector<64x128xf32>
    %c0_65 = arith.constant 0 : index
    %c0_66 = arith.constant 0 : index
    %363 = vector.load %arg17[%c0_65, %c0_66] : memref<64x128xf32, #tpu.memory_space<vmem>>, vector<64x128xf32>
    tpu.vector_store %arg17[%c0_65, %c0_66], %362 {strides = array<i32>} : memref<64x128xf32, #tpu.memory_space<vmem>>, vector<64x128xf32>,
    %c0_67 = arith.constant 0 : index
    %c0_68 = arith.constant 0 : index
    %364 = vector.load %arg12[%c0_67, %c0_68] : memref<32x32xf32, #tpu.memory_space<vmem>>, vector<32x32xf32>
    %cst_69 = arith.constant dense<0.000000e+00> : vector<8x32xf32>
    %365 = tpu.matmul %328, %364, %cst_69 {dimension_numbers = #tpu.dot_dimension_numbers<[1], [0], [0], [1], [0, 0, 1, 1], [], []>} : vector<8x32xf32>, vector<32x32xf32>, vector<8x32xf32> -> vector<8x32xf32>
    %c0_70 = arith.constant 0 : index
    %c0_71 = arith.constant 0 : index
    %366 = vector.load %arg13[%c0_70, %c0_71] : memref<32x32xf32, #tpu.memory_space<vmem>>, vector<32x32xf32>
    %cst_72 = arith.constant dense<0.000000e+00> : vector<8x32xf32>
    %367 = tpu.matmul %345, %366, %cst_72 {dimension_numbers = #tpu.dot_dimension_numbers<[1], [0], [0], [1], [0, 0, 1, 1], [], []>} : vector<8x32xf32>, vector<32x32xf32>, vector<8x32xf32> -> vector<8x32xf32>
    %368 = arith.addf %365, %367 : vector<8x32xf32>
    %c0_73 = arith.constant 0 : index
    %c0_74 = arith.constant 0 : index
    %369 = vector.load %arg14[%c0_73, %c0_74] : memref<1x32xf32, #tpu.memory_space<vmem>>, vector<1x32xf32>
    %370 = vector.broadcast %369 : vector<1x32xf32> to vector<8x32xf32>
    %371 = arith.addf %368, %370 : vector<8x32xf32>
    %cst_75 = arith.constant 0.000000e+00 : f32
    %372 = vector.broadcast %cst_75 : f32 to vector<8x32xf32>
    %373 = arith.maximumf %371, %372 : vector<8x32xf32>
    %c0_76 = arith.constant 0 : index
    %c0_77 = arith.constant 0 : index
    %374 = vector.load %arg15[%c0_76, %c0_77] : memref<32x128xf32, #tpu.memory_space<vmem>>, vector<32x128xf32>
    %cst_78 = arith.constant dense<0.000000e+00> : vector<8x128xf32>
    %375 = tpu.matmul %373, %374, %cst_78 {dimension_numbers = #tpu.dot_dimension_numbers<[1], [0], [0], [1], [0, 0, 1, 1], [], []>} : vector<8x32xf32>, vector<32x128xf32>, vector<8x128xf32> -> vector<8x128xf32>
    %c0_79 = arith.constant 0 : index
    %c0_80 = arith.constant 0 : index
    %376 = vector.load %arg16[%c0_79, %c0_80] : memref<1x128xf32, #tpu.memory_space<vmem>>, vector<1x128xf32>
    %377 = vector.broadcast %376 : vector<1x128xf32> to vector<8x128xf32>
    %378 = arith.addf %375, %377 : vector<8x128xf32>
    %379 = arith.negf %378 : vector<8x128xf32>
    %380 = math.exp %379 : vector<8x128xf32>
    %cst_81 = arith.constant 1.000000e+00 : f32
    %381 = vector.broadcast %cst_81 : f32 to vector<8x128xf32>
    %382 = arith.addf %381, %380 : vector<8x128xf32>
    %383 = arith.divf %381, %382 : vector<8x128xf32>
    %c0_82 = arith.constant 0 : index
    %c0_83 = arith.constant 0 : index
    %384 = vector.load %arg18[%c0_82, %c0_83] : memref<8x128xf32, #tpu.memory_space<vmem>>, vector<8x128xf32>
    tpu.vector_store %arg18[%c0_82, %c0_83], %383 {strides = array<i32>} : memref<8x128xf32, #tpu.memory_space<vmem>>, vector<8x128xf32>,
    return
  }
}

</mosaic_0001>

<bundles_post_ra>
// kernel: bilstm_multitask_forward.1
= control target key start
LH: loop header
LB: loop body
LE: loop exit
PB: predicated region body
PF: predicated region fallthrough
CT: control target
= control target key end

     0   :  { %vm75_vm0 = vcmask 130048   ;;  %v3262_v10 = vmov 0.0   ;;  %vm3263_vm1 = vmmov 0   ;;  %v327_v29 = vlaneseq  ;;  %s4079_s1 = inlined_call_operand.vmem [shape: f32[16,128], index: 1, kind: input, shape index: {}]   ;;  %s4080_s0 = inlined_call_operand.vmem [shape: f32[64,16], index: 0, kind: input, shape index: {}]   ;;  %s4081_s4 = inlined_call_operand.vmem [shape: f32[16,128], index: 4, kind: input, shape index: {}]   ;;  %s4082_s5 = inlined_call_operand.vmem [shape: f32[32,128], index: 5, kind: input, shape index: {}]   ;;  %s4083_s2 = inlined_call_operand.vmem [shape: f32[32,128], index: 2, kind: input, shape index: {}]   ;;  %s4084_s3 = inlined_call_operand.vmem [shape: f32[1,128], index: 3, kind: input, shape index: {}]   ;;  %s4085_s6 = inlined_call_operand.vmem [shape: f32[1,128], index: 6, kind: input, shape index: {}]   ;;  %s4086_s7 = inlined_call_operand.vmem [shape: f32[32,32], index: 7, kind: input, shape index: {}]   ;;  %s4087_s8 = inlined_call_operand.vmem [shape: f32[32,32], index: 8, kind: input, shape index: {}]   ;;  %s4088_s13 = inlined_call_operand.vmem [shape: f32[32,32], index: 13, kind: input, shape index: {}]   ;;  %s4089_s10 = inlined_call_operand.vmem [shape: f32[32,128], index: 10, kind: input, shape index: {}]   ;;  %s4090_s12 = inlined_call_operand.vmem [shape: f32[32,32], index: 12, kind: input, shape index: {}]   ;;  %s4091_s9 = inlined_call_operand.vmem [shape: f32[1,32], index: 9, kind: input, shape index: {}]   ;;  %s4092_s15 = inlined_call_operand.vmem [shape: f32[32,128], index: 15, kind: input, shape index: {}]   ;;  %s4093_s14 = inlined_call_operand.vmem [shape: f32[1,32], index: 14, kind: input, shape index: {}]   ;;  %s4094_s11 = inlined_call_operand.vmem [shape: f32[1,128], index: 11, kind: input, shape index: {}]   ;;  %s4095_s17 = inlined_call_operand.vmem [shape: f32[64,128], index: 17, kind: output, shape index: {0}]   ;;  %s4096_s16 = inlined_call_operand.vmem [shape: f32[1,128], index: 16, kind: input, shape index: {}]   ;;  %s4097_s18 = inlined_call_operand.vmem [shape: f32[8,128], index: 18, kind: output, shape index: {1}]  }
   0x1   :  { %4101 = sst [smem:[#allocation2_spill]] %s4079_s1  ;;  %v3392_v8 = vld [vmem:[%s4082_s5 + $0x18] sm:$0xff]  ;;  %v3403_v11 = vld [vmem:[%s4082_s5 + $0x10] sm:$0xff]  ;;  %v3420_v14 = vld [vmem:[%s4082_s5 + $0x8] sm:$0xff]  ;;  %v3264_v58 = vmov 1.0   ;;  %vm334_vm5 = vcmask 261120  }
   0x2   :  { %4102 = sst [smem:[#allocation3_spill]] %s4080_s0  ;;  %v3427_v15 = vld [vmem:[%s4083_s2 + $0x18] sm:$0xff]  ;;  %v3439_v17 = vld [vmem:[%s4083_s2 + $0x10] sm:$0xff]  ;;  %v3448_v18 = vld [vmem:[%s4083_s2 + $0x8] sm:$0xff]  ;;  %v328_v37 = vand.u32 127, %v327_v29 }
   0x3   :  { %4103 = sst [smem:[#allocation4_spill]] %s4081_s4  ;;  %v3457_v19 = vld [vmem:[%s4082_s5] sm:$0xff] }
   0x4   :  { %s4104_s29 = sld [smem:[#allocation2_spill]]  ;;  %v3462_v20 = vld [vmem:[%s4083_s2] sm:$0xff]  ;;  %vm329_vm2 = vcmp.ge.s32.totalorder %v328_v37, 64  ;;  %vm330_vm3 = vcmp.lt.s32.totalorder %v328_v37, 96 }
   0x5   :  { %s4105_s20 = sld [smem:[#allocation3_spill]]  ;;  %v2615_v21 = vld [vmem:[%s4084_s3] ss:$0 sm:$0xff]  ;;  %vm3528_vm4 = vmand %vm329_vm2, %vm330_vm3  ;;  %s3265_s3 = smov 64  }
   0x6   :  { %s4106_s24 = sld [smem:[#allocation4_spill]]  ;;  %v2624_v25 = vld [vmem:[%s4085_s6] ss:$0 sm:$0xff]  ;;  %v3538_v59 = vsel %vm3528_vm4, 2.0, %v3264_v58  ;;  %s3266_s6 = smov 32  }
   0xa   :  { %v67_v0 = vld [vmem:[%s4104_s29 + $0x8] sm:$0xff]  ;;  %v66_v1 = vld [vmem:[%s4104_s29] sm:$0xff] }
   0xb   :  { %v64_v2 = vld [vmem:[%s4105_s20 + $0x30] sm:$0xff]  ;;  %3147 = vmatprep.subr.mxu1 %v67_v0  ;;  %v65_v3 = vld [vmem:[%s4105_s20 + $0x38] sm:$0xff]  ;;  %2846 = vmatprep.subr.mxu0 %v67_v0  ;;  %v58_v5 = vld [vmem:[%s4105_s20] sm:$0xff] }
   0xc   :  { %2859 = vmatprep.mubr.msk.f32.mxu1 %vm75_vm0, %v64_v2  ;;  %3149 = vmatpush3.msra.mxu1 %v67_v0  ;;  %v206_v4 = vld [vmem:[%s4106_s24 + $0x8] sm:$0xff]  ;;  %v205_v6 = vld [vmem:[%s4106_s24] sm:$0xff]  ;;  %v60_v9 = vld [vmem:[%s4105_s20 + $0x10] sm:$0xff] }
   0xd   :  { %3148 = vmatprep.subr.mxu1 %v66_v1  ;;  %2847 = vmatpush3.msra.mxu0 %v67_v0  ;;  %v59_v7 = vld [vmem:[%s4105_s20 + $0x8] sm:$0xff]  ;;  %v61_v12 = vld [vmem:[%s4105_s20 + $0x18] sm:$0xff]  ;;  %v62_v13 = vld [vmem:[%s4105_s20 + $0x20] sm:$0xff] }
   0xe   :  { %3150 = vmatpush3.msra.mxu1 %v66_v1  ;;  %2848 = vmatprep.subr.mxu0 %v66_v1  ;;  %v63_v16 = vld [vmem:[%s4105_s20 + $0x28] sm:$0xff] }
   0xf   :  { %2860 = vmatmul.mubr.msk.f32.vlgmr.msra.gmra.mxu1 %vm75_vm0, %v65_v3  ;;  %2862 = vmatprep.subr.mxu1 %v206_v4 }
  0x10   :  { %2863 = vmatpush3.msra.mxu1 %v206_v4  ;;  %2866 = vmatprep.mubr.msk.f32.mxu1 %vm75_vm0, %v58_v5 }
  0x11   :  { %2864 = vmatprep.subr.mxu1 %v205_v6  ;;  %2849 = vmatpush3.msra.mxu0 %v66_v1 }
  0x12   :  { %2865 = vmatpush3.msra.mxu1 %v205_v6  ;;  %2850 = vmatprep.mubr.msk.f32.mxu0 %vm75_vm0, %v58_v5 }
  0x13   :  { %2867 = vmatmul.mubr.msk.f32.vlgmr.msra.gmra.mxu1 %vm75_vm0, %v59_v7  ;;  %2889 = vmatprep.subr.mxu1 %v3262_v10 }
  0x14   :  { %2890 = vmatpush3.msra.mxu1 %v3392_v8  ;;  %2869 = vmatprep.mubr.msk.f32.mxu1 %vm75_vm0, %v60_v9 }
  0x15   :  { %2851 = vmatmul.mubr.msk.f32.vlgmr.msra.gmra.mxu0 %vm75_vm0, %v59_v7  ;;  %2891 = vmatprep.subr.mxu1 %v3262_v10 }
  0x16   :  { %2892 = vmatpush3.msra.mxu1 %v3403_v11  ;;  %2853 = vmatprep.mubr.msk.f32.mxu0 %vm75_vm0, %v60_v9 }
  0x17   :  { %2870 = vmatmul.mubr.msk.f32.gmra.mxu1 %vm75_vm0, %v61_v12  ;;  %2878 = vmatprep.subr.mxu0 %v3262_v10 }
  0x18   :  { %2872 = vmatprep.mubr.msk.f32.mxu1 %vm75_vm0, %v62_v13  ;;  %2893 = vmatprep.subr.mxu1 %v3262_v10 }
  0x19   :  { %2854 = vmatmul.mubr.msk.f32.gmra.mxu0 %vm75_vm0, %v61_v12  ;;  %2894 = vmatpush3.msra.mxu1 %v3420_v14 }
  0x1a   :  { %2879 = vmatpush3.msra.mxu0 %v3427_v15  ;;  %2856 = vmatprep.mubr.msk.f32.mxu0 %vm75_vm0, %v62_v13 }
  0x1b   :  { %2873 = vmatmul.mubr.msk.f32.gmra.mxu1 %vm75_vm0, %v63_v16  ;;  %2880 = vmatprep.subr.mxu0 %v3262_v10 }
  0x1c   :  { %2875 = vmatprep.mubr.msk.f32.mxu1 %vm75_vm0, %v64_v2  ;;  %2881 = vmatpush3.msra.mxu0 %v3439_v17 }
  0x1d   :  { %2857 = vmatmul.mubr.msk.f32.gmra.mxu0 %vm75_vm0, %v63_v16  ;;  %2882 = vmatprep.subr.mxu0 %v3262_v10 }
  0x1e   :  { %2895 = vmatprep.subr.mxu1 %v3262_v10  ;;  %2883 = vmatpush3.msra.mxu0 %v3448_v18 }
  0x1f   :  { %2876 = vmatmul.mubr.msk.f32.gmra.mxu1 %vm75_vm0, %v65_v3  ;;  %2884 = vmatprep.subr.mxu0 %v3262_v10 }
  0x20   :  { %2896 = vmatpush3.msra.mxu1 %v3457_v19  ;;  %2885 = vmatpush3.msra.mxu0 %v3462_v20 }
  0x21   :  { %2886 = vmatprep.mubr.msk.f32.mxu0 %vm3263_vm1, %v3262_v10  ;;  %2897 = vmatprep.mubr.msk.f32.mxu1 %vm3263_vm1, %v3262_v10 }
  0x22   :  { %2887 = vmatmul.mubr.f32.vlgmr.msra.gmra.mxu0 %v3262_v10  ;;  %2911 = vmatprep.subr.mxu1 %v3262_v10 }
  0x23   :  { %2898 = vmatmul.mubr.f32.vlgmr.msra.gmra.mxu1 %v3262_v10  ;;  %2900 = vmatprep.subr.mxu0 %v3262_v10 }
  0x24   :  { %2912 = vmatpush3.msra.mxu1 %v3392_v8  ;;  %2901 = vmatpush3.msra.mxu0 %v3427_v15 }
  0x25   :  { %2913 = vmatprep.subr.mxu1 %v3262_v10  ;;  %2902 = vmatprep.subr.mxu0 %v3262_v10 }
  0x26   :  { %2914 = vmatpush3.msra.mxu1 %v3403_v11  ;;  %2903 = vmatpush3.msra.mxu0 %v3439_v17 }
  0x27   :  { %2915 = vmatprep.subr.mxu1 %v3262_v10  ;;  %2919 = vmatprep.mubr.msk.f32.mxu1 %vm3263_vm1, %v3262_v10 }
  0x28   :  { %2916 = vmatpush3.msra.mxu1 %v3420_v14  ;;  %2904 = vmatprep.subr.mxu0 %v3262_v10 }
  0x29   :  { %2917 = vmatprep.subr.mxu1 %v3262_v10  ;;  %2905 = vmatpush3.msra.mxu0 %v3448_v18 }
  0x2a   :  { %2918 = vmatpush3.msra.mxu1 %v3457_v19  ;;  %2906 = vmatprep.subr.mxu0 %v3262_v10 }
  0x2b   :  { %2907 = vmatpush3.msra.mxu0 %v3462_v20  ;;  %2908 = vmatprep.mubr.msk.f32.mxu0 %vm3263_vm1, %v3262_v10 }
  0x2c   :  { %2933 = vmatprep.subr.mxu1 %v3262_v10  ;;  %2922 = vmatprep.subr.mxu0 %v3262_v10 }
  0xcf   :  { %v2861_v22 = vpop.f32.mrf.mxu1 }
  0xd0   :  { %v3501_v23 = vadd.f32 %v2861_v22, %v2615_v21 }
  0xd1   :  { %v196_v24 = vpop.f32.mrf.mxu1 }
  0xd2   :  { %v3506_v26 = vadd.f32 %v2615_v21, %v196_v24 }
  0xd3   :  { %v2868_v27 = vpop.f32.mrf.mxu1 }
  0xd4   :  { %v3508_v28 = vadd.f32 %v2868_v27, %v2624_v25 }
  0xd5   :  { %v280_v30 = vpop.f32.mrf.mxu1  ;;  %v2852_v31 = vpop.f32.mrf.mxu0 }
  0xd6   :  { %v3510_v32 = vadd.f32 %v2624_v25, %v280_v30  ;;  %v3512_v33 = vadd.f32 %v2852_v31, %v2615_v21 }
  0xd7   :  { %v2871_v34 = vpop.f32.mrf.mxu1  ;;  %v166_v35 = vpop.f32.mrf.mxu0 }
  0xd8   :  { %v3514_v36 = vadd.f32 %v2871_v34, %v2624_v25  ;;  %v167_v50 = vadd.f32 %v2615_v21, %v166_v35 }
  0xd9   :  { %v290_v38 = vpop.f32.mrf.mxu1  ;;  %v2855_v39 = vpop.f32.mrf.mxu0 }
  0xda   :  { %v3516_v40 = vadd.f32 %v2624_v25, %v290_v38  ;;  %v3518_v41 = vadd.f32 %v2855_v39, %v2615_v21 }
  0xdb   :  { %v2874_v42 = vpop.f32.mrf.mxu1  ;;  %v176_v43 = vpop.f32.mrf.mxu0 }
  0xdc   :  { %v3520_v44 = vadd.f32 %v2874_v42, %v2624_v25  ;;  %v3522_v45 = vadd.f32 %v2615_v21, %v176_v43 }
  0xdd   :  { %v300_v46 = vpop.f32.mrf.mxu1  ;;  %v2858_v47 = vpop.f32.mrf.mxu0 }
  0xde   :  { %v3524_v48 = vadd.f32 %v2624_v25, %v300_v46  ;;  %v3526_v49 = vadd.f32 %v2858_v47, %v2615_v21 }
  0xdf   :  { %v2877_v51 = vpop.f32.mrf.mxu1  ;;  %v186_v52 = vpop.f32.mrf.mxu0 }
  0xe0   :  { %v3532_v54 = vadd.f32 %v2615_v21, %v186_v52  ;;  %v316_v56 = vadd.f32 %v2877_v51, %v2624_v25  ;;  %v3545_v21 = vsel %vm3528_vm4, -1.0, %v3262_v10 }
  0xe1   :  { %v310_v55 = vpop.f32.mrf.mxu1 }
  0xe2   :  { %v3534_v57 = vadd.f32 %v2624_v25, %v310_v55  ;;  %v404_v60 = vpop.f32.mrf.mxu0 }
  0xe3   :  { %v408_v61 = vadd.f32 %v404_v60, %v167_v50  ;;  %v475_v62 = vpop.f32.mrf.mxu1 }
  0xe4   :  { %v479_v63 = vadd.f32 %v475_v62, %v316_v56  ;;  %v2888_v0 = vpop.f32.mrf.mxu0 }
  0xe5   :  { %v480_v1 = vmul.f32 %v408_v61, %v3538_v59  ;;  %v2899_v2 = vpop.f32.mrf.mxu1 }
  0xe6   :  { %v506_v3 = vmul.f32 %v479_v63, %v3538_v59 }
  0xe7   :  { %v2633_v4 = vmul.f32 -1.442695, %v480_v1 }
  0xe8   :  { %v2634_v5 = vmul.f32 -1.442695, %v506_v3 }
  0xe9   :  { %3156 = vpow2.f32 %v2633_v4 }
  0xea   :  { %3158 = vpow2.f32 %v2634_v5 }
  0xf6   :  { %v3157_v6 = vpop.eup %3156 }
  0xf7   :  { %v3159_v7 = vpop.eup %3158  ;;  %v484_v9 = vadd.f32 1.0, %v3157_v6 }
  0xf8   :  { %v510_v12 = vadd.f32 1.0, %v3159_v7 }
  0xf9   :  { %3160 = vrcp.f32 %v484_v9 }
  0xfa   :  { %3162 = vrcp.f32 %v510_v12 }
 0x106   :  { %v3161_v13 = vpop.eup %3160 }
 0x107   :  { %v3163_v16 = vpop.eup %3162  ;;  %v487_v25 = vmul.f32 %v3161_v13, %v3538_v59 }
 0x108   :  { %v513_v22 = vmul.f32 %v3163_v16, %v3538_v59 }
 0x109   :  { %v488_v27 = vadd.f32 %v487_v25, %v3545_v21 }
 0x10a   :  { %v514_v24 = vadd.f32 %v513_v22, %v3545_v21 }
 0x10b   :  { %v489_v39 = vmul.f32 0.0, %v488_v27 }
 0x10c   :  { %517 = vrot.lane.b32.xlu0 %v514_v24, %s3265_s3  ;;  %v515_v35 = vmul.f32 0.0, %v514_v24 }
 0x110   :  { %491 = vrot.lane.b32.xlu0 %v488_v27, %s3265_s3 }
 0x17e   :  { %v518_v29 = vpop.permute.xlu0 %517 }
 0x17f   :  { %v520_v30 = vmul.f32 %v518_v29, %v514_v24 }
 0x181   :  { %522 = vrot.lane.b32.xlu1 %v520_v30, %s3266_s6 }
 0x182   :  { %v492_v31 = vpop.permute.xlu0 %491 }
 0x183   :  { %v494_v34 = vmul.f32 %v492_v31, %v488_v27 }
 0x185   :  { %496 = vrot.lane.b32.xlu1 %v494_v34, %s3266_s6 }
 0x1f3   :  { %v523_v37 = vpop.permute.xlu1 %522 }
 0x1f4   :  { %v3555_v38 = vadd.f32 %v523_v37, %v515_v35 }
 0x1f6   :  { %3164 = vtanh.f32 %v3555_v38 }
 0x1f7   :  { %v497_v42 = vpop.permute.xlu1 %496 }
 0x1f8   :  { %v3558_v43 = vadd.f32 %v497_v42, %v489_v39 }
 0x1fa   :  { %3166 = vtanh.f32 %v3558_v43 }
 0x203   :  { %v3165_v46 = vpop.eup %3164 }
 0x204   :  { %528 = vrot.lane.b32.xlu0 %v3165_v46, %s3265_s3 }
 0x207   :  { %v3167_v47 = vpop.eup %3166 }
 0x208   :  { %502 = vrot.lane.b32.xlu1 %v3167_v47, %s3265_s3 }
 0x276   :  { %v529_v50 = vpop.permute.xlu0 %528 }
 0x277   :  { %v531_v51 = vmul.f32 %v529_v50, %v514_v24 }
 0x279   :  { %609 = vrot.lane.b32.xlu0 %v531_v51, %s3266_s6 }
 0x27a   :  { %v503_v52 = vpop.permute.xlu1 %502 }
 0x27b   :  { %v505_v53 = vmul.f32 %v503_v52, %v488_v27 }
 0x27d   :  { %533 = vrot.lane.b32.xlu1 %v505_v53, %s3266_s6 }
 0x2eb   :  { %v3565_v55 = vpop.permute.xlu0 %609 }
 0x2ec   :  { %2920 = vmatmul.mubr.msk.f32.vlgmr.msra.gmra.mxu1 %vm334_vm5, %v3565_v55 }
 0x2ed   :  { %2934 = vmatpush3.msra.mxu1 %v3392_v8  ;;  %2941 = vmatprep.mubr.msk.f32.mxu1 %vm3263_vm1, %v3262_v10 }
 0x2ee   :  { %2935 = vmatprep.subr.mxu1 %v3262_v10 }
 0x2ef   :  { %v3573_v56 = vpop.permute.xlu1 %533  ;;  %2936 = vmatpush3.msra.mxu1 %v3403_v11 }
 0x2f0   :  { %2909 = vmatmul.mubr.msk.f32.vlgmr.msra.gmra.mxu0 %vm334_vm5, %v3573_v56  ;;  %2937 = vmatprep.subr.mxu1 %v3262_v10 }
 0x2f1   :  { %2923 = vmatpush3.msra.mxu0 %v3427_v15  ;;  %2938 = vmatpush3.msra.mxu1 %v3420_v14 }
 0x2f2   :  { %2924 = vmatprep.subr.mxu0 %v3262_v10  ;;  %2939 = vmatprep.subr.mxu1 %v3262_v10 }
 0x2f3   :  { %2940 = vmatpush3.msra.mxu1 %v3457_v19  ;;  %2925 = vmatpush3.msra.mxu0 %v3439_v17 }
 0x2f4   :  { %2926 = vmatprep.subr.mxu0 %v3262_v10  ;;  %2930 = vmatprep.mubr.msk.f32.mxu0 %vm3263_vm1, %v3262_v10 }
 0x2f5   :  { %2927 = vmatpush3.msra.mxu0 %v3448_v18  ;;  %2955 = vmatprep.subr.mxu1 %v3262_v10 }
 0x2f6   :  { %2928 = vmatprep.subr.mxu0 %v3262_v10 }
 0x2f7   :  { %2929 = vmatpush3.msra.mxu0 %v3462_v20 }
 0x2f8   :  { %2944 = vmatprep.subr.mxu0 %v3262_v10 }
 0x3ac   :  { %v679_v58 = vpop.f32.mrf.mxu1 }
 0x3ad   :  { %v683_v60 = vadd.f32 %v679_v58, %v3534_v57 }
 0x3ae   :  { %v2921_v61 = vpop.f32.mrf.mxu1 }
 0x3af   :  { %v710_v62 = vmul.f32 %v683_v60, %v3538_v59 }
 0x3b0   :  { %v603_v63 = vpop.f32.mrf.mxu0 }
 0x3b1   :  { %v2638_v0 = vmul.f32 -1.442695, %v710_v62  ;;  %v607_v1 = vadd.f32 %v603_v63, %v3512_v33 }
 0x3b2   :  { %v2910_v2 = vpop.f32.mrf.mxu0 }
 0x3b3   :  { %3168 = vpow2.f32 %v2638_v0  ;;  %v684_v3 = vmul.f32 %v607_v1, %v3538_v59 }
 0x3b5   :  { %v2637_v4 = vmul.f32 -1.442695, %v684_v3 }
 0x3b7   :  { %3170 = vpow2.f32 %v2637_v4 }
 0x3c0   :  { %v3169_v5 = vpop.eup %3168 }
 0x3c1   :  { %v714_v6 = vadd.f32 1.0, %v3169_v5 }
 0x3c3   :  { %3172 = vrcp.f32 %v714_v6 }
 0x3c4   :  { %v3171_v7 = vpop.eup %3170 }
 0x3c5   :  { %v688_v9 = vadd.f32 1.0, %v3171_v7 }
 0x3c7   :  { %3174 = vrcp.f32 %v688_v9 }
 0x3d0   :  { %v3173_v57 = vpop.eup %3172 }
 0x3d1   :  { %v717_v12 = vmul.f32 %v3173_v57, %v3538_v59 }
 0x3d3   :  { %v718_v13 = vadd.f32 %v717_v12, %v3545_v21 }
 0x3d4   :  { %v3175_v16 = vpop.eup %3174 }
 0x3d5   :  { %721 = vrot.lane.b32.xlu0 %v718_v13, %s3265_s3  ;;  %v691_v33 = vmul.f32 %v3175_v16, %v3538_v59  ;;  %v719_v30 = vmul.f32 %v718_v13, %v3555_v38 }
 0x3d7   :  { %v692_v22 = vadd.f32 %v691_v33, %v3545_v21 }
 0x3d9   :  { %695 = vrot.lane.b32.xlu1 %v692_v22, %s3265_s3  ;;  %v693_v35 = vmul.f32 %v692_v22, %v3558_v43 }
 0x447   :  { %v722_v24 = vpop.permute.xlu0 %721 }
 0x448   :  { %v724_v25 = vmul.f32 %v722_v24, %v718_v13 }
 0x44a   :  { %726 = vrot.lane.b32.xlu0 %v724_v25, %s3266_s6 }
 0x44b   :  { %v696_v27 = vpop.permute.xlu1 %695 }
 0x44c   :  { %v698_v29 = vmul.f32 %v696_v27, %v692_v22 }
 0x44e   :  { %700 = vrot.lane.b32.xlu1 %v698_v29, %s3266_s6 }
 0x4bc   :  { %v727_v31 = vpop.permute.xlu0 %726 }
 0x4bd   :  { %v3606_v34 = vadd.f32 %v727_v31, %v719_v30 }
 0x4bf   :  { %3176 = vtanh.f32 %v3606_v34 }
 0x4c0   :  { %v701_v37 = vpop.permute.xlu1 %700 }
 0x4c1   :  { %v3610_v39 = vadd.f32 %v701_v37, %v693_v35 }
 0x4c3   :  { %3178 = vtanh.f32 %v3610_v39 }
 0x4cc   :  { %v3177_v42 = vpop.eup %3176 }
 0x4cd   :  { %732 = vrot.lane.b32.xlu0 %v3177_v42, %s3265_s3 }
 0x4d0   :  { %v3179_v46 = vpop.eup %3178 }
 0x4d1   :  { %706 = vrot.lane.b32.xlu1 %v3179_v46, %s3265_s3 }
 0x53f   :  { %v733_v47 = vpop.permute.xlu0 %732 }
 0x540   :  { %v735_v38 = vmul.f32 %v733_v47, %v718_v13 }
 0x542   :  { %813 = vrot.lane.b32.xlu0 %v735_v38, %s3266_s6 }
 0x543   :  { %v707_v50 = vpop.permute.xlu1 %706 }
 0x544   :  { %v709_v51 = vmul.f32 %v707_v50, %v692_v22 }
 0x546   :  { %737 = vrot.lane.b32.xlu1 %v709_v51, %s3266_s6 }
 0x5b4   :  { %v3617_v43 = vpop.permute.xlu0 %813 }
 0x5b5   :  { %2942 = vmatmul.mubr.msk.f32.vlgmr.msra.gmra.mxu1 %vm334_vm5, %v3617_v43 }
 0x5b6   :  { %2956 = vmatpush3.msra.mxu1 %v3392_v8  ;;  %2963 = vmatprep.mubr.msk.f32.mxu1 %vm3263_vm1, %v3262_v10 }
 0x5b7   :  { %2957 = vmatprep.subr.mxu1 %v3262_v10 }
 0x5b8   :  { %v3625_v52 = vpop.permute.xlu1 %737  ;;  %2958 = vmatpush3.msra.mxu1 %v3403_v11 }
 0x5b9   :  { %2931 = vmatmul.mubr.msk.f32.vlgmr.msra.gmra.mxu0 %vm334_vm5, %v3625_v52  ;;  %2959 = vmatprep.subr.mxu1 %v3262_v10 }
 0x5ba   :  { %2945 = vmatpush3.msra.mxu0 %v3427_v15  ;;  %2960 = vmatpush3.msra.mxu1 %v3420_v14 }
 0x5bb   :  { %2946 = vmatprep.subr.mxu0 %v3262_v10  ;;  %2961 = vmatprep.subr.mxu1 %v3262_v10 }
 0x5bc   :  { %2962 = vmatpush3.msra.mxu1 %v3457_v19  ;;  %2947 = vmatpush3.msra.mxu0 %v3439_v17 }
 0x5bd   :  { %2948 = vmatprep.subr.mxu0 %v3262_v10  ;;  %2952 = vmatprep.mubr.msk.f32.mxu0 %vm3263_vm1, %v3262_v10 }
 0x5be   :  { %2949 = vmatpush3.msra.mxu0 %v3448_v18  ;;  %2977 = vmatprep.subr.mxu1 %v3262_v10 }
 0x5bf   :  { %2950 = vmatprep.subr.mxu0 %v3262_v10 }
 0x5c0   :  { %2951 = vmatpush3.msra.mxu0 %v3462_v20 }
 0x5c1   :  { %2966 = vmatprep.subr.mxu0 %v3262_v10 }
 0x675   :  { %v883_v53 = vpop.f32.mrf.mxu1 }
 0x676   :  { %v887_v58 = vadd.f32 %v883_v53, %v3520_v44 }
 0x677   :  { %v2943_v60 = vpop.f32.mrf.mxu1 }
 0x678   :  { %v914_v61 = vmul.f32 %v887_v58, %v3538_v59 }
 0x679   :  { %v807_v62 = vpop.f32.mrf.mxu0 }
 0x67a   :  { %v2642_v63 = vmul.f32 -1.442695, %v914_v61  ;;  %v811_v0 = vadd.f32 %v807_v62, %v3522_v45 }
 0x67b   :  { %v2932_v1 = vpop.f32.mrf.mxu0 }
 0x67c   :  { %3180 = vpow2.f32 %v2642_v63  ;;  %v888_v2 = vmul.f32 %v811_v0, %v3538_v59 }
 0x67e   :  { %v2641_v3 = vmul.f32 -1.442695, %v888_v2 }
 0x680   :  { %3182 = vpow2.f32 %v2641_v3 }
 0x689   :  { %v3181_v4 = vpop.eup %3180 }
 0x68a   :  { %v918_v5 = vadd.f32 1.0, %v3181_v4 }
 0x68c   :  { %3184 = vrcp.f32 %v918_v5 }
 0x68d   :  { %v3183_v6 = vpop.eup %3182 }
 0x68e   :  { %v892_v7 = vadd.f32 1.0, %v3183_v6 }
 0x690   :  { %3186 = vrcp.f32 %v892_v7 }
 0x699   :  { %v3185_v44 = vpop.eup %3184 }
 0x69a   :  { %v921_v9 = vmul.f32 %v3185_v44, %v3538_v59 }
 0x69c   :  { %v922_v57 = vadd.f32 %v921_v9, %v3545_v21 }
 0x69d   :  { %v3187_v12 = vpop.eup %3186 }
 0x69e   :  { %925 = vrot.lane.b32.xlu0 %v922_v57, %s3265_s3  ;;  %v895_v45 = vmul.f32 %v3187_v12, %v3538_v59  ;;  %v923_v25 = vmul.f32 %v922_v57, %v3606_v34 }
 0x6a0   :  { %v896_v13 = vadd.f32 %v895_v45, %v3545_v21 }
 0x6a2   :  { %899 = vrot.lane.b32.xlu1 %v896_v13, %s3265_s3  ;;  %v897_v30 = vmul.f32 %v896_v13, %v3610_v39 }
 0x710   :  { %v926_v16 = vpop.permute.xlu0 %925 }
 0x711   :  { %v928_v33 = vmul.f32 %v926_v16, %v922_v57 }
 0x713   :  { %930 = vrot.lane.b32.xlu0 %v928_v33, %s3266_s6 }
 0x714   :  { %v900_v22 = vpop.permute.xlu1 %899 }
 0x715   :  { %v902_v24 = vmul.f32 %v900_v22, %v896_v13 }
 0x717   :  { %904 = vrot.lane.b32.xlu1 %v902_v24, %s3266_s6 }
 0x785   :  { %v931_v27 = vpop.permute.xlu0 %930 }
 0x786   :  { %v3658_v29 = vadd.f32 %v931_v27, %v923_v25 }
 0x788   :  { %3188 = vtanh.f32 %v3658_v29 }
 0x789   :  { %v905_v31 = vpop.permute.xlu1 %904 }
 0x78a   :  { %v3662_v35 = vadd.f32 %v905_v31, %v897_v30 }
 0x78c   :  { %3190 = vtanh.f32 %v3662_v35 }
 0x795   :  { %v3189_v37 = vpop.eup %3188 }
 0x796   :  { %936 = vrot.lane.b32.xlu0 %v3189_v37, %s3265_s3 }
 0x799   :  { %v3191_v42 = vpop.eup %3190 }
 0x79a   :  { %910 = vrot.lane.b32.xlu1 %v3191_v42, %s3265_s3 }
 0x808   :  { %v937_v46 = vpop.permute.xlu0 %936 }
 0x809   :  { %v939_v34 = vmul.f32 %v937_v46, %v922_v57 }
 0x80b   :  { %1017 = vrot.lane.b32.xlu0 %v939_v34, %s3266_s6 }
 0x80c   :  { %v911_v47 = vpop.permute.xlu1 %910 }
 0x80d   :  { %v913_v38 = vmul.f32 %v911_v47, %v896_v13 }
 0x80f   :  { %941 = vrot.lane.b32.xlu1 %v913_v38, %s3266_s6 }
 0x87d   :  { %v3669_v39 = vpop.permute.xlu0 %1017 }
 0x87e   :  { %2964 = vmatmul.mubr.msk.f32.vlgmr.msra.gmra.mxu1 %vm334_vm5, %v3669_v39 }
 0x87f   :  { %2978 = vmatpush3.msra.mxu1 %v3392_v8  ;;  %2985 = vmatprep.mubr.msk.f32.mxu1 %vm3263_vm1, %v3262_v10 }
 0x880   :  { %2979 = vmatprep.subr.mxu1 %v3262_v10 }
 0x881   :  { %v3677_v50 = vpop.permute.xlu1 %941  ;;  %2980 = vmatpush3.msra.mxu1 %v3403_v11 }
 0x882   :  { %2953 = vmatmul.mubr.msk.f32.vlgmr.msra.gmra.mxu0 %vm334_vm5, %v3677_v50  ;;  %2981 = vmatprep.subr.mxu1 %v3262_v10 }
 0x883   :  { %2967 = vmatpush3.msra.mxu0 %v3427_v15  ;;  %2982 = vmatpush3.msra.mxu1 %v3420_v14 }
 0x884   :  { %2968 = vmatprep.subr.mxu0 %v3262_v10  ;;  %2983 = vmatprep.subr.mxu1 %v3262_v10 }
 0x885   :  { %2984 = vmatpush3.msra.mxu1 %v3457_v19  ;;  %2969 = vmatpush3.msra.mxu0 %v3439_v17 }
 0x886   :  { %2970 = vmatprep.subr.mxu0 %v3262_v10  ;;  %2974 = vmatprep.mubr.msk.f32.mxu0 %vm3263_vm1, %v3262_v10 }
 0x887   :  { %2971 = vmatpush3.msra.mxu0 %v3448_v18  ;;  %2999 = vmatprep.subr.mxu1 %v3262_v10 }
 0x888   :  { %2972 = vmatprep.subr.mxu0 %v3262_v10 }
 0x889   :  { %2973 = vmatpush3.msra.mxu0 %v3462_v20 }
 0x88a   :  { %2988 = vmatprep.subr.mxu0 %v3262_v10 }
 0x93e   :  { %v1087_v51 = vpop.f32.mrf.mxu1 }
 0x93f   :  { %v1091_v53 = vadd.f32 %v1087_v51, %v3524_v48 }
 0x940   :  { %v2965_v58 = vpop.f32.mrf.mxu1 }
 0x941   :  { %v1118_v60 = vmul.f32 %v1091_v53, %v3538_v59 }
 0x942   :  { %v1011_v61 = vpop.f32.mrf.mxu0 }
 0x943   :  { %v2646_v62 = vmul.f32 -1.442695, %v1118_v60  ;;  %v1015_v63 = vadd.f32 %v1011_v61, %v3518_v41 }
 0x944   :  { %v2954_v0 = vpop.f32.mrf.mxu0 }
 0x945   :  { %3192 = vpow2.f32 %v2646_v62  ;;  %v1092_v1 = vmul.f32 %v1015_v63, %v3538_v59 }
 0x947   :  { %v2645_v2 = vmul.f32 -1.442695, %v1092_v1 }
 0x949   :  { %3194 = vpow2.f32 %v2645_v2 }
 0x952   :  { %v3193_v3 = vpop.eup %3192 }
 0x953   :  { %v1122_v4 = vadd.f32 1.0, %v3193_v3 }
 0x955   :  { %3196 = vrcp.f32 %v1122_v4 }
 0x956   :  { %v3195_v5 = vpop.eup %3194 }
 0x957   :  { %v1096_v6 = vadd.f32 1.0, %v3195_v5 }
 0x959   :  { %3198 = vrcp.f32 %v1096_v6 }
 0x962   :  { %v3197_v48 = vpop.eup %3196 }
 0x963   :  { %v1125_v7 = vmul.f32 %v3197_v48, %v3538_v59 }
 0x965   :  { %v1126_v44 = vadd.f32 %v1125_v7, %v3545_v21 }
 0x966   :  { %v3199_v9 = vpop.eup %3198 }
 0x967   :  { %1129 = vrot.lane.b32.xlu0 %v1126_v44, %s3265_s3  ;;  %v1099_v41 = vmul.f32 %v3199_v9, %v3538_v59  ;;  %v1127_v33 = vmul.f32 %v1126_v44, %v3658_v29 }
 0x969   :  { %v1100_v57 = vadd.f32 %v1099_v41, %v3545_v21 }
 0x96b   :  { %1103 = vrot.lane.b32.xlu1 %v1100_v57, %s3265_s3  ;;  %v1101_v25 = vmul.f32 %v1100_v57, %v3662_v35 }
 0x9d9   :  { %v1130_v12 = vpop.permute.xlu0 %1129 }
 0x9da   :  { %v1132_v45 = vmul.f32 %v1130_v12, %v1126_v44 }
 0x9dc   :  { %1134 = vrot.lane.b32.xlu0 %v1132_v45, %s3266_s6 }
 0x9dd   :  { %v1104_v13 = vpop.permute.xlu1 %1103 }
 0x9de   :  { %v1106_v16 = vmul.f32 %v1104_v13, %v1100_v57 }
 0x9e0   :  { %1108 = vrot.lane.b32.xlu1 %v1106_v16, %s3266_s6 }
 0xa4e   :  { %v1135_v22 = vpop.permute.xlu0 %1134 }
 0xa4f   :  { %v3710_v24 = vadd.f32 %v1135_v22, %v1127_v33 }
 0xa51   :  { %3200 = vtanh.f32 %v3710_v24 }
 0xa52   :  { %v1109_v27 = vpop.permute.xlu1 %1108 }
 0xa53   :  { %v3714_v30 = vadd.f32 %v1109_v27, %v1101_v25 }
 0xa55   :  { %3202 = vtanh.f32 %v3714_v30 }
 0xa5e   :  { %v3201_v31 = vpop.eup %3200 }
 0xa5f   :  { %1140 = vrot.lane.b32.xlu0 %v3201_v31, %s3265_s3 }
 0xa62   :  { %v3203_v37 = vpop.eup %3202 }
 0xa63   :  { %1114 = vrot.lane.b32.xlu1 %v3203_v37, %s3265_s3 }
 0xad1   :  { %v1141_v42 = vpop.permute.xlu0 %1140 }
 0xad2   :  { %v1143_v29 = vmul.f32 %v1141_v42, %v1126_v44 }
 0xad4   :  { %1221 = vrot.lane.b32.xlu0 %v1143_v29, %s3266_s6 }
 0xad5   :  { %v1115_v46 = vpop.permute.xlu1 %1114 }
 0xad6   :  { %v1117_v34 = vmul.f32 %v1115_v46, %v1100_v57 }
 0xad8   :  { %1145 = vrot.lane.b32.xlu1 %v1117_v34, %s3266_s6 }
 0xb46   :  { %v3721_v35 = vpop.permute.xlu0 %1221 }
 0xb47   :  { %2986 = vmatmul.mubr.msk.f32.vlgmr.msra.gmra.mxu1 %vm334_vm5, %v3721_v35 }
 0xb48   :  { %3000 = vmatpush3.msra.mxu1 %v3392_v8  ;;  %3007 = vmatprep.mubr.msk.f32.mxu1 %vm3263_vm1, %v3262_v10 }
 0xb49   :  { %3001 = vmatprep.subr.mxu1 %v3262_v10 }
 0xb4a   :  { %v3729_v47 = vpop.permute.xlu1 %1145  ;;  %3002 = vmatpush3.msra.mxu1 %v3403_v11 }
 0xb4b   :  { %2975 = vmatmul.mubr.msk.f32.vlgmr.msra.gmra.mxu0 %vm334_vm5, %v3729_v47  ;;  %3003 = vmatprep.subr.mxu1 %v3262_v10 }
 0xb4c   :  { %2989 = vmatpush3.msra.mxu0 %v3427_v15  ;;  %3004 = vmatpush3.msra.mxu1 %v3420_v14 }
 0xb4d   :  { %2990 = vmatprep.subr.mxu0 %v3262_v10  ;;  %3005 = vmatprep.subr.mxu1 %v3262_v10 }
 0xb4e   :  { %3006 = vmatpush3.msra.mxu1 %v3457_v19  ;;  %2991 = vmatpush3.msra.mxu0 %v3439_v17 }
 0xb4f   :  { %2992 = vmatprep.subr.mxu0 %v3262_v10  ;;  %2996 = vmatprep.mubr.msk.f32.mxu0 %vm3263_vm1, %v3262_v10 }
 0xb50   :  { %2993 = vmatpush3.msra.mxu0 %v3448_v18  ;;  %3021 = vmatprep.subr.mxu1 %v3262_v10 }
 0xb51   :  { %2994 = vmatprep.subr.mxu0 %v3262_v10 }
 0xb52   :  { %2995 = vmatpush3.msra.mxu0 %v3462_v20 }
 0xb53   :  { %3010 = vmatprep.subr.mxu0 %v3262_v10 }
 0xc07   :  { %v1291_v38 = vpop.f32.mrf.mxu1 }
 0xc08   :  { %v1295_v51 = vadd.f32 %v1291_v38, %v3514_v36 }
 0xc09   :  { %v2987_v53 = vpop.f32.mrf.mxu1 }
 0xc0a   :  { %v1322_v58 = vmul.f32 %v1295_v51, %v3538_v59 }
 0xc0b   :  { %v1215_v60 = vpop.f32.mrf.mxu0 }
 0xc0c   :  { %v2650_v61 = vmul.f32 -1.442695, %v1322_v58  ;;  %v1219_v62 = vadd.f32 %v1215_v60, %v3532_v54 }
 0xc0d   :  { %v2976_v63 = vpop.f32.mrf.mxu0 }
 0xc0e   :  { %3204 = vpow2.f32 %v2650_v61  ;;  %v1296_v0 = vmul.f32 %v1219_v62, %v3538_v59 }
 0xc10   :  { %v2649_v1 = vmul.f32 -1.442695, %v1296_v0 }
 0xc12   :  { %3206 = vpow2.f32 %v2649_v1 }
 0xc1b   :  { %v3205_v2 = vpop.eup %3204 }
 0xc1c   :  { %v1326_v3 = vadd.f32 1.0, %v3205_v2 }
 0xc1e   :  { %3208 = vrcp.f32 %v1326_v3 }
 0xc1f   :  { %v3207_v4 = vpop.eup %3206 }
 0xc20   :  { %v1300_v5 = vadd.f32 1.0, %v3207_v4 }
 0xc22   :  { %3210 = vrcp.f32 %v1300_v5 }
 0xc2b   :  { %v3209_v36 = vpop.eup %3208 }
 0xc2c   :  { %v1329_v6 = vmul.f32 %v3209_v36, %v3538_v59 }
 0xc2e   :  { %v1330_v48 = vadd.f32 %v1329_v6, %v3545_v21 }
 0xc2f   :  { %v3211_v7 = vpop.eup %3210 }
 0xc30   :  { %1333 = vrot.lane.b32.xlu0 %v1330_v48, %s3265_s3  ;;  %v1303_v54 = vmul.f32 %v3211_v7, %v3538_v59  ;;  %v1331_v45 = vmul.f32 %v1330_v48, %v3710_v24 }
 0xc32   :  { %v1304_v44 = vadd.f32 %v1303_v54, %v3545_v21 }
 0xc34   :  { %1307 = vrot.lane.b32.xlu1 %v1304_v44, %s3265_s3  ;;  %v1305_v33 = vmul.f32 %v1304_v44, %v3714_v30 }
 0xca2   :  { %v1334_v9 = vpop.permute.xlu0 %1333 }
 0xca3   :  { %v1336_v41 = vmul.f32 %v1334_v9, %v1330_v48 }
 0xca5   :  { %1338 = vrot.lane.b32.xlu0 %v1336_v41, %s3266_s6 }
 0xca6   :  { %v1308_v57 = vpop.permute.xlu1 %1307 }
 0xca7   :  { %v1310_v12 = vmul.f32 %v1308_v57, %v1304_v44 }
 0xca9   :  { %1312 = vrot.lane.b32.xlu1 %v1310_v12, %s3266_s6 }
 0xd17   :  { %v1339_v13 = vpop.permute.xlu0 %1338 }
 0xd18   :  { %v3762_v16 = vadd.f32 %v1339_v13, %v1331_v45 }
 0xd1a   :  { %3212 = vtanh.f32 %v3762_v16 }
 0xd1b   :  { %v1313_v22 = vpop.permute.xlu1 %1312 }
 0xd1c   :  { %v3766_v25 = vadd.f32 %v1313_v22, %v1305_v33  ;;  %v3256_v22 = vld [vmem:[%s4082_s5 + $0x18] sm:$0xff] }
 0xd1e   :  { %3214 = vtanh.f32 %v3766_v25 }
 0xd27   :  { %v3213_v27 = vpop.eup %3212 }
 0xd28   :  { %1344 = vrot.lane.b32.xlu0 %v3213_v27, %s3265_s3  ;;  %v3257_v27 = vld [vmem:[%s4082_s5 + $0x10] sm:$0xff] }
 0xd2b   :  { %v3215_v31 = vpop.eup %3214 }
 0xd2c   :  { %1318 = vrot.lane.b32.xlu1 %v3215_v31, %s3265_s3  ;;  %v3258_v31 = vld [vmem:[%s4082_s5 + $0x8] sm:$0xff] }
 0xd9a   :  { %v1345_v37 = vpop.permute.xlu0 %1344 }
 0xd9b   :  { %v1347_v24 = vmul.f32 %v1345_v37, %v1330_v48  ;;  %v3259_v37 = vld [vmem:[%s4083_s2 + $0x18] sm:$0xff] }
 0xd9d   :  { %1425 = vrot.lane.b32.xlu0 %v1347_v24, %s3266_s6  ;;  %v3260_v24 = vld [vmem:[%s4083_s2 + $0x10] sm:$0xff] }
 0xd9e   :  { %v1319_v42 = vpop.permute.xlu1 %1318 }
 0xd9f   :  { %v1321_v29 = vmul.f32 %v1319_v42, %v1304_v44  ;;  %v3261_v42 = vld [vmem:[%s4083_s2 + $0x8] sm:$0xff] }
 0xda1   :  { %1349 = vrot.lane.b32.xlu1 %v1321_v29, %s3266_s6 }
 0xe0f   :  { %v3773_v30 = vpop.permute.xlu0 %1425 }
 0xe10   :  { %3008 = vmatmul.mubr.msk.f32.vlgmr.msra.gmra.mxu1 %vm334_vm5, %v3773_v30 }
 0xe11   :  { %3022 = vmatpush3.msra.mxu1 %v3392_v8  ;;  %3029 = vmatprep.mubr.msk.f32.mxu1 %vm3263_vm1, %v3262_v10 }
 0xe12   :  { %3023 = vmatprep.subr.mxu1 %v3262_v10 }
 0xe13   :  { %v3781_v46 = vpop.permute.xlu1 %1349  ;;  %3024 = vmatpush3.msra.mxu1 %v3403_v11 }
 0xe14   :  { %2997 = vmatmul.mubr.msk.f32.vlgmr.msra.gmra.mxu0 %vm334_vm5, %v3781_v46  ;;  %3025 = vmatprep.subr.mxu1 %v3262_v10 }
 0xe15   :  { %3011 = vmatpush3.msra.mxu0 %v3427_v15  ;;  %3026 = vmatpush3.msra.mxu1 %v3420_v14 }
 0xe16   :  { %3012 = vmatprep.subr.mxu0 %v3262_v10  ;;  %3027 = vmatprep.subr.mxu1 %v3262_v10 }
 0xe17   :  { %3028 = vmatpush3.msra.mxu1 %v3457_v19  ;;  %3013 = vmatpush3.msra.mxu0 %v3439_v17 }
 0xe18   :  { %3014 = vmatprep.subr.mxu0 %v3262_v10  ;;  %3018 = vmatprep.mubr.msk.f32.mxu0 %vm3263_vm1, %v3262_v10 }
 0xe19   :  { %3015 = vmatpush3.msra.mxu0 %v3448_v18  ;;  %3043 = vmatprep.subr.mxu1 %v3262_v10 }
 0xe1a   :  { %3016 = vmatprep.subr.mxu0 %v3262_v10 }
 0xe1b   :  { %3017 = vmatpush3.msra.mxu0 %v3462_v20 }
 0xe1c   :  { %3032 = vmatprep.subr.mxu0 %v3262_v10 }
 0xed0   :  { %v1495_v8 = vpop.f32.mrf.mxu1 }
 0xed1   :  { %v1499_v11 = vadd.f32 %v1495_v8, %v3516_v40 }
 0xed2   :  { %v3009_v14 = vpop.f32.mrf.mxu1 }
 0xed3   :  { %v1526_v15 = vmul.f32 %v1499_v11, %v3538_v59 }
 0xed4   :  { %v1419_v17 = vpop.f32.mrf.mxu0 }
 0xed5   :  { %v2654_v34 = vmul.f32 -1.442695, %v1526_v15  ;;  %v1423_v38 = vadd.f32 %v1419_v17, %v3526_v49 }
 0xed6   :  { %v2998_v51 = vpop.f32.mrf.mxu0 }
 0xed7   :  { %3216 = vpow2.f32 %v2654_v34  ;;  %v1500_v18 = vmul.f32 %v1423_v38, %v3538_v59 }
 0xed9   :  { %v2653_v53 = vmul.f32 -1.442695, %v1500_v18 }
 0xedb   :  { %3218 = vpow2.f32 %v2653_v53 }
 0xee4   :  { %v3217_v58 = vpop.eup %3216 }
 0xee5   :  { %v1530_v60 = vadd.f32 1.0, %v3217_v58 }
 0xee7   :  { %3220 = vrcp.f32 %v1530_v60 }
 0xee8   :  { %v3219_v61 = vpop.eup %3218 }
 0xee9   :  { %v1504_v62 = vadd.f32 1.0, %v3219_v61 }
 0xeeb   :  { %3222 = vrcp.f32 %v1504_v62 }
 0xef4   :  { %v3221_v40 = vpop.eup %3220 }
 0xef5   :  { %v1533_v63 = vmul.f32 %v3221_v40, %v3538_v59 }
 0xef7   :  { %v1534_v0 = vadd.f32 %v1533_v63, %v3545_v21 }
 0xef8   :  { %v3223_v1 = vpop.eup %3222 }
 0xef9   :  { %1537 = vrot.lane.b32.xlu0 %v1534_v0, %s3265_s3  ;;  %v1507_v49 = vmul.f32 %v3223_v1, %v3538_v59  ;;  %v1535_v6 = vmul.f32 %v1534_v0, %v3762_v16 }
 0xefb   :  { %v1508_v2 = vadd.f32 %v1507_v49, %v3545_v21 }
 0xefd   :  { %1511 = vrot.lane.b32.xlu1 %v1508_v2, %s3265_s3  ;;  %v1509_v54 = vmul.f32 %v1508_v2, %v3766_v25 }
 0xf6b   :  { %v1538_v3 = vpop.permute.xlu0 %1537 }
 0xf6c   :  { %v1540_v4 = vmul.f32 %v1538_v3, %v1534_v0 }
 0xf6e   :  { %1542 = vrot.lane.b32.xlu0 %v1540_v4, %s3266_s6 }
 0xf6f   :  { %v1512_v5 = vpop.permute.xlu1 %1511 }
 0xf70   :  { %v1514_v36 = vmul.f32 %v1512_v5, %v1508_v2 }
 0xf72   :  { %1516 = vrot.lane.b32.xlu1 %v1514_v36, %s3266_s6 }
 0xfe0   :  { %v1543_v48 = vpop.permute.xlu0 %1542 }
 0xfe1   :  { %v3814_v7 = vadd.f32 %v1543_v48, %v1535_v6  ;;  %v1963_v48 = vld [vmem:[%s4086_s7 + $0x18] sm:$0xff] }
 0xfe3   :  { %3224 = vtanh.f32 %v3814_v7 }
 0xfe4   :  { %v1517_v44 = vpop.permute.xlu1 %1516 }
 0xfe5   :  { %v3818_v9 = vadd.f32 %v1517_v44, %v1509_v54 }
 0xfe7   :  { %3226 = vtanh.f32 %v3818_v9 }
 0xff0   :  { %v3225_v41 = vpop.eup %3224 }
 0xff1   :  { %1548 = vrot.lane.b32.xlu0 %v3225_v41, %s3265_s3 }
 0xff4   :  { %v3227_v57 = vpop.eup %3226 }
 0xff5   :  { %1522 = vrot.lane.b32.xlu1 %v3227_v57, %s3265_s3 }
0x1063   :  { %v1549_v12 = vpop.permute.xlu0 %1548 }
0x1064   :  { %v1551_v45 = vmul.f32 %v1549_v12, %v1534_v0 }
0x1066   :  { %1629 = vrot.lane.b32.xlu0 %v1551_v45, %s3266_s6  ;;  %v1962_v45 = vld [vmem:[%s4086_s7 + $0x10] sm:$0xff] }
0x1067   :  { %v1523_v13 = vpop.permute.xlu1 %1522 }
0x1068   :  { %v1525_v16 = vmul.f32 %v1523_v13, %v1508_v2  ;;  %v1961_v13 = vld [vmem:[%s4086_s7 + $0x8] sm:$0xff] }
0x106a   :  { %1553 = vrot.lane.b32.xlu1 %v1525_v16, %s3266_s6 }
0x10d8   :  { %v3825_v33 = vpop.permute.xlu0 %1629 }
0x10d9   :  { %3030 = vmatmul.mubr.msk.f32.vlgmr.msra.gmra.mxu1 %vm334_vm5, %v3825_v33 }
0x10da   :  { %3044 = vmatpush3.msra.mxu1 %v3256_v22  ;;  %3051 = vmatprep.mubr.msk.f32.mxu1 %vm3263_vm1, %v3262_v10  ;;  %v1960_v22 = vld [vmem:[%s4086_s7] sm:$0xff] }
0x10db   :  { %3045 = vmatprep.subr.mxu1 %v3262_v10 }
0x10dc   :  { %v3835_v25 = vpop.permute.xlu1 %1553  ;;  %3046 = vmatpush3.msra.mxu1 %v3257_v27 }
0x10dd   :  { %3019 = vmatmul.mubr.msk.f32.vlgmr.msra.gmra.mxu0 %vm334_vm5, %v3835_v25  ;;  %3047 = vmatprep.subr.mxu1 %v3262_v10 }
0x10de   :  { %3048 = vmatpush3.msra.mxu1 %v3258_v31  ;;  %3033 = vmatpush3.msra.mxu0 %v3259_v37 }
0x10df   :  { %3049 = vmatprep.subr.mxu1 %v3262_v10  ;;  %3034 = vmatprep.subr.mxu0 %v3262_v10 }
0x10e0   :  { %3050 = vmatpush3.msra.mxu1 %v3457_v19  ;;  %3035 = vmatpush3.msra.mxu0 %v3260_v24 }
0x10e1   :  { %3036 = vmatprep.subr.mxu0 %v3262_v10  ;;  %3040 = vmatprep.mubr.msk.f32.mxu0 %vm3263_vm1, %v3262_v10 }
0x10e2   :  { %3037 = vmatpush3.msra.mxu0 %v3261_v42  ;;  %3074 = vmatprep.subr.mxu1 %v1963_v48 }
0x10e3   :  { %3038 = vmatprep.subr.mxu0 %v3262_v10 }
0x10e4   :  { %3039 = vmatpush3.msra.mxu0 %v3462_v20 }
0x1199   :  { %v1699_v19 = vpop.f32.mrf.mxu1 }
0x119a   :  { %v1703_v29 = vadd.f32 %v1699_v19, %v3508_v28 }
0x119b   :  { %v3031_v8 = vpop.f32.mrf.mxu1 }
0x119c   :  { %v1730_v11 = vmul.f32 %v1703_v29, %v3538_v59 }
0x119d   :  { %v1623_v14 = vpop.f32.mrf.mxu0 }
0x119e   :  { %v2658_v15 = vmul.f32 -1.442695, %v1730_v11  ;;  %v1627_v17 = vadd.f32 %v1623_v14, %v3506_v26 }
0x119f   :  { %v3020_v34 = vpop.f32.mrf.mxu0 }
0x11a0   :  { %3228 = vpow2.f32 %v2658_v15  ;;  %v1704_v38 = vmul.f32 %v1627_v17, %v3538_v59 }
0x11a2   :  { %v2657_v51 = vmul.f32 -1.442695, %v1704_v38 }
0x11a4   :  { %3230 = vpow2.f32 %v2657_v51 }
0x11ad   :  { %v3229_v18 = vpop.eup %3228 }
0x11ae   :  { %v1734_v53 = vadd.f32 1.0, %v3229_v18 }
0x11b0   :  { %3232 = vrcp.f32 %v1734_v53 }
0x11b1   :  { %v3231_v20 = vpop.eup %3230 }
0x11b2   :  { %v1708_v58 = vadd.f32 1.0, %v3231_v20 }
0x11b4   :  { %3234 = vrcp.f32 %v1708_v58 }
0x11bd   :  { %v3233_v28 = vpop.eup %3232 }
0x11be   :  { %v1737_v60 = vmul.f32 %v3233_v28, %v3538_v59 }
0x11c0   :  { %v1738_v61 = vadd.f32 %v1737_v60, %v3545_v21 }
0x11c1   :  { %v3235_v62 = vpop.eup %3234 }
0x11c2   :  { %1741 = vrot.lane.b32.xlu0 %v1738_v61, %s3265_s3  ;;  %v1711_v26 = vmul.f32 %v3235_v62, %v3538_v59  ;;  %v1739_v2 = vmul.f32 %v1738_v61, %v3814_v7  ;;  %v2366_v62 = vld [vmem:[%s4088_s13 + $0x18] sm:$0xff] }
0x11c4   :  { %v1712_v40 = vadd.f32 %v1711_v26, %v3545_v21  ;;  %v1965_v26 = vld [vmem:[%s4087_s8 + $0x8] sm:$0xff] }
0x11c6   :  { %1715 = vrot.lane.b32.xlu1 %v1712_v40, %s3265_s3  ;;  %v1713_v5 = vmul.f32 %v1712_v40, %v3818_v9 }
0x1234   :  { %v1742_v63 = vpop.permute.xlu0 %1741 }
0x1235   :  { %v1744_v0 = vmul.f32 %v1742_v63, %v1738_v61 }
0x1237   :  { %1746 = vrot.lane.b32.xlu0 %v1744_v0, %s3266_s6  ;;  %v1964_v0 = vld [vmem:[%s4087_s8] sm:$0xff] }
0x1238   :  { %v1716_v1 = vpop.permute.xlu1 %1715 }
0x1239   :  { %v1718_v49 = vmul.f32 %v1716_v1, %v1712_v40  ;;  %v2365_v1 = vld [vmem:[%s4088_s13 + $0x10] sm:$0xff] }
0x123b   :  { %1720 = vrot.lane.b32.xlu1 %v1718_v49, %s3266_s6  ;;  %v2364_v49 = vld [vmem:[%s4088_s13 + $0x8] sm:$0xff] }
0x12a9   :  { %v1747_v3 = vpop.permute.xlu0 %1746 }
0x12aa   :  { %v3876_v4 = vadd.f32 %v1747_v3, %v1739_v2  ;;  %v2363_v2 = vld [vmem:[%s4088_s13] sm:$0xff] }
0x12ac   :  { %3236 = vtanh.f32 %v3876_v4 }
0x12ad   :  { %v1721_v36 = vpop.permute.xlu1 %1720 }
0x12ae   :  { %v3880_v6 = vadd.f32 %v1721_v36, %v1713_v5 }
0x12b0   :  { %3238 = vtanh.f32 %v3880_v6 }
0x12b9   :  { %v3237_v54 = vpop.eup %3236 }
0x12ba   :  { %1752 = vrot.lane.b32.xlu0 %v3237_v54, %s3265_s3  ;;  %v2213_v54 = vld [vmem:[%s4089_s10 + $0x10] sm:$0xff] }
0x12bd   :  { %v3239_v7 = vpop.eup %3238 }
0x12be   :  { %1726 = vrot.lane.b32.xlu1 %v3239_v7, %s3265_s3 }
0x132c   :  { %v1753_v44 = vpop.permute.xlu0 %1752 }
0x132d   :  { %v1755_v41 = vmul.f32 %v1753_v44, %v1738_v61  ;;  %v1966_v61 = vld [vmem:[%s4087_s8 + $0x10] sm:$0xff]  ;;  %v2362_v44 = vld [vmem:[%s4090_s12 + $0x18] sm:$0xff] }
0x132f   :  { %1833 = vrot.lane.b32.xlu0 %v1755_v41, %s3266_s6 }
0x1330   :  { %v1727_v9 = vpop.permute.xlu1 %1726 }
0x1331   :  { %v1729_v57 = vmul.f32 %v1727_v9, %v1712_v40 }
0x1333   :  { %1757 = vrot.lane.b32.xlu1 %v1729_v57, %s3266_s6 }
0x13a1   :  { %v3890_v12 = vpop.permute.xlu0 %1833 }
0x13a2   :  { %3052 = vmatmul.mubr.msk.f32.vlgmr.msra.gmra.mxu1 %vm334_vm5, %v3890_v12 }
0x13a3   :  { %3075 = vmatpush3.msra.mxu1 %v1963_v48  ;;  %3082 = vmatprep.mubr.msk.f32.mxu1 %vm334_vm5, %v3573_v56 }
0x13a4   :  { %3076 = vmatprep.subr.mxu1 %v1962_v45 }
0x13a5   :  { %3077 = vmatpush3.msra.mxu1 %v1962_v45  ;;  %v1758_v16 = vpop.permute.xlu1 %1757 }
0x13a6   :  { %3078 = vmatprep.subr.mxu1 %v1961_v13  ;;  %3041 = vmatmul.mubr.msk.f32.vlgmr.msra.gmra.mxu0 %vm334_vm5, %v1758_v16 }
0x13a7   :  { %3079 = vmatpush3.msra.mxu1 %v1961_v13 }
0x13a8   :  { %3080 = vmatprep.subr.mxu1 %v1960_v22 }
0x13a9   :  { %3081 = vmatpush3.msra.mxu1 %v1960_v22  ;;  %v2679_v22 = vld [vmem:[%s4091_s9] ss:$0 sm:$0xff] }
0x13aa   :  { %3083 = vmatmul.mubr.msk.f32.vlgmr.msra.gmra.mxu1 %vm334_vm5, %v3625_v52  ;;  %3114 = vmatprep.subr.mxu1 %v3262_v10 }
0x13ab   :  { %3085 = vmatprep.mubr.msk.f32.mxu1 %vm334_vm5, %v3677_v50  ;;  %3115 = vmatpush3.msra.mxu1 %v2366_v62 }
0x13ac   :  { %3116 = vmatprep.subr.mxu1 %v3262_v10 }
0x13ad   :  { %3117 = vmatpush3.msra.mxu1 %v2365_v1 }
0x13ae   :  { %3086 = vmatmul.mubr.msk.f32.gmra.mxu1 %vm334_vm5, %v3729_v47  ;;  %3118 = vmatprep.subr.mxu1 %v3262_v10 }
0x13af   :  { %3088 = vmatprep.mubr.msk.f32.mxu1 %vm334_vm5, %v3781_v46  ;;  %3119 = vmatpush3.msra.mxu1 %v2364_v49  ;;  %v2691_v49 = vld [vmem:[%s4093_s14] ss:$0 sm:$0xff] }
0x13b0   :  { %3120 = vmatprep.subr.mxu1 %v3262_v10 }
0x13b1   :  { %3121 = vmatpush3.msra.mxu1 %v2363_v2 }
0x13b2   :  { %3089 = vmatmul.mubr.msk.f32.gmra.mxu1 %vm334_vm5, %v3835_v25  ;;  %3125 = vmatprep.subr.mxu1 %v3262_v10 }
0x13b3   :  { %3091 = vmatprep.mubr.msk.f32.mxu1 %vm334_vm5, %v1758_v16 }
0x1462   :  { %v1903_v56 = vpop.f32.mrf.mxu1 }
0x1463   :  { %v1907_v27 = vadd.f32 %v1903_v56, %v3510_v32 }
0x1464   :  { %v3053_v52 = vpop.f32.mrf.mxu1 }
0x1465   :  { %v1934_v31 = vmul.f32 %v1907_v27, %v3538_v59 }
0x1466   :  { %v1827_v37 = vpop.f32.mrf.mxu0 }
0x1467   :  { %v2662_v24 = vmul.f32 -1.442695, %v1934_v31  ;;  %v1831_v50 = vadd.f32 %v1827_v37, %v3501_v23 }
0x1468   :  { %v3042_v42 = vpop.f32.mrf.mxu0 }
0x1469   :  { %3240 = vpow2.f32 %v2662_v24  ;;  %v1908_v47 = vmul.f32 %v1831_v50, %v3538_v59 }
0x146b   :  { %v2661_v46 = vmul.f32 -1.442695, %v1908_v47 }
0x146d   :  { %3242 = vpow2.f32 %v2661_v46 }
0x1476   :  { %v3241_v19 = vpop.eup %3240 }
0x1477   :  { %v1938_v25 = vadd.f32 1.0, %v3241_v19 }
0x1479   :  { %3244 = vrcp.f32 %v1938_v25 }
0x147a   :  { %v3243_v29 = vpop.eup %3242 }
0x147b   :  { %v1912_v8 = vadd.f32 1.0, %v3243_v29 }
0x147d   :  { %3246 = vrcp.f32 %v1912_v8 }
0x1486   :  { %v3245_v32 = vpop.eup %3244 }
0x1487   :  { %v1941_v11 = vmul.f32 %v3245_v32, %v3538_v59 }
0x1489   :  { %v1942_v14 = vadd.f32 %v1941_v11, %v3545_v21  ;;  %v2519_v11 = vld [vmem:[%s4092_s15 + $0x18] sm:$0xff] }
0x148a   :  { %v3247_v15 = vpop.eup %3246 }
0x148b   :  { %1945 = vrot.lane.b32.xlu0 %v1942_v14, %s3265_s3  ;;  %v1915_v23 = vmul.f32 %v3247_v15, %v3538_v59  ;;  %v1943_v53 = vmul.f32 %v1942_v14, %v3876_v4 }
0x148d   :  { %v1916_v17 = vadd.f32 %v1915_v23, %v3545_v21  ;;  %v1967_v21 = vld [vmem:[%s4087_s8 + $0x18] sm:$0xff] }
0x148e   :  { %3054 = vmatprep.subr.mxu0 %v1967_v21 }
0x148f   :  { %1919 = vrot.lane.b32.xlu1 %v1916_v17, %s3265_s3  ;;  %v1917_v28 = vmul.f32 %v1916_v17, %v3880_v6  ;;  %3055 = vmatpush3.msra.mxu0 %v1967_v21  ;;  %v2214_v6 = vld [vmem:[%s4089_s10 + $0x18] sm:$0xff]  ;;  %v2516_v21 = vld [vmem:[%s4092_s15] sm:$0xff] }
0x1490   :  { %3056 = vmatprep.subr.mxu0 %v1966_v61 }
0x1491   :  { %3057 = vmatpush3.msra.mxu0 %v1966_v61 }
0x1492   :  { %3058 = vmatprep.subr.mxu0 %v1965_v26 }
0x1493   :  { %3059 = vmatpush3.msra.mxu0 %v1965_v26 }
0x1494   :  { %3060 = vmatprep.subr.mxu0 %v1964_v0 }
0x1495   :  { %3061 = vmatpush3.msra.mxu0 %v1964_v0 }
0x1496   :  { %3094 = vmatprep.subr.mxu0 %v2214_v6 }
0x14fd   :  { %v1946_v34 = vpop.permute.xlu0 %1945 }
0x14fe   :  { %v1948_v38 = vmul.f32 %v1946_v34, %v1942_v14  ;;  %v2518_v34 = vld [vmem:[%s4092_s15 + $0x10] sm:$0xff] }
0x1500   :  { %1950 = vrot.lane.b32.xlu0 %v1948_v38, %s3266_s6 }
0x1501   :  { %v1920_v51 = vpop.permute.xlu1 %1919 }
0x1502   :  { %v1922_v18 = vmul.f32 %v1920_v51, %v1916_v17 }
0x1504   :  { %1924 = vrot.lane.b32.xlu1 %v1922_v18, %s3266_s6 }
0x1572   :  { %v1951_v20 = vpop.permute.xlu0 %1950 }
0x1573   :  { %v1953_v58 = vadd.f32 %v1951_v20, %v1943_v53 }
0x1575   :  { %3248 = vtanh.f32 %v1953_v58  ;;  %v2517_v58 = vld [vmem:[%s4092_s15 + $0x8] sm:$0xff] }
0x1576   :  { %v1925_v59 = vpop.permute.xlu1 %1924 }
0x1577   :  { %v1927_v60 = vadd.f32 %v1925_v59, %v1917_v28 }
0x1579   :  { %3250 = vtanh.f32 %v1927_v60 }
0x1582   :  { %v3249_v40 = vpop.eup %3248 }
0x1583   :  { %1956 = vrot.lane.b32.xlu0 %v3249_v40, %s3265_s3 }
0x1586   :  { %v3251_v63 = vpop.eup %3250 }
0x1587   :  { %1930 = vrot.lane.b32.xlu1 %v3251_v63, %s3265_s3 }
0x15f5   :  { %v1957_v3 = vpop.permute.xlu0 %1956 }
0x15f6   :  { %v1959_v4 = vmul.f32 %v1957_v3, %v1942_v14 }
0x15f8   :  { %1969 = vrot.lane.b32.xlu0 %v1959_v4, %s3266_s6 }
0x15f9   :  { %v1931_v5 = vpop.permute.xlu1 %1930 }
0x15fa   :  { %v1933_v36 = vmul.f32 %v1931_v5, %v1916_v17 }
0x15fc   :  { %2079 = vrot.lane.b32.xlu1 %v1933_v36, %s3266_s6 }
0x166a   :  { %v1970_v48 = vpop.permute.xlu0 %1969 }
0x166b   :  { %3062 = vmatprep.mubr.msk.f32.mxu0 %vm334_vm5, %v1970_v48 }
0x166c   :  { %3063 = vmatmul.mubr.msk.f32.vlgmr.msra.gmra.mxu0 %vm334_vm5, %v3890_v12 }
0x166d   :  { %3065 = vmatprep.mubr.msk.f32.mxu0 %vm334_vm5, %v3825_v33  ;;  %3095 = vmatpush3.msra.mxu0 %v2214_v6  ;;  %v2361_v33 = vld [vmem:[%s4090_s12 + $0x10] sm:$0xff]  ;;  %v2680_v6 = vld [vmem:[%s4094_s11] ss:$0 sm:$0xff] }
0x166e   :  { %v2080_v7 = vpop.permute.xlu1 %2079  ;;  %3096 = vmatprep.subr.mxu0 %v2213_v54 }
0x166f   :  { %3092 = vmatmul.mubr.msk.f32.gmra.mxu1 %vm334_vm5, %v2080_v7  ;;  %3097 = vmatpush3.msra.mxu0 %v2213_v54 }
0x1670   :  { %3066 = vmatmul.mubr.msk.f32.gmra.mxu0 %vm334_vm5, %v3773_v30  ;;  %3122 = vmatprep.mubr.msk.f32.mxu1 %vm3263_vm1, %v3262_v10  ;;  %v2359_v30 = vld [vmem:[%s4090_s12] sm:$0xff] }
0x1671   :  { %3068 = vmatprep.mubr.msk.f32.mxu0 %vm334_vm5, %v3721_v35  ;;  %v2360_v35 = vld [vmem:[%s4090_s12 + $0x8] sm:$0xff] }
0x1673   :  { %3123 = vmatmul.mubr.msk.f32.vlgmr.msra.gmra.mxu1 %vm334_vm5, %v1970_v48 }
0x1674   :  { %3126 = vmatpush3.msra.mxu1 %v2362_v44  ;;  %3069 = vmatmul.mubr.msk.f32.gmra.mxu0 %vm334_vm5, %v3669_v39  ;;  %v2211_v39 = vld [vmem:[%s4089_s10] sm:$0xff] }
0x1675   :  { %3127 = vmatprep.subr.mxu1 %v3262_v10  ;;  %3071 = vmatprep.mubr.msk.f32.mxu0 %vm334_vm5, %v3617_v43  ;;  %v2212_v43 = vld [vmem:[%s4089_s10 + $0x8] sm:$0xff] }
0x1676   :  { %3128 = vmatpush3.msra.mxu1 %v2361_v33  ;;  %3133 = vmatprep.mubr.msk.f32.mxu1 %vm3263_vm1, %v3262_v10 }
0x1677   :  { %3129 = vmatprep.subr.mxu1 %v3262_v10  ;;  %3098 = vmatprep.subr.mxu0 %v2212_v43 }
0x1678   :  { %3130 = vmatpush3.msra.mxu1 %v2360_v35  ;;  %3072 = vmatmul.mubr.msk.f32.gmra.mxu0 %vm334_vm5, %v3565_v55  ;;  %v3084_v55 = vpop.f32.mrf.mxu1 }
0x1679   :  { %3131 = vmatprep.subr.mxu1 %v3262_v10  ;;  %3099 = vmatpush3.msra.mxu0 %v2212_v43 }
0x167a   :  { %3132 = vmatpush3.msra.mxu1 %v2359_v30  ;;  %3100 = vmatprep.subr.mxu0 %v2211_v39  ;;  %v2149_v41 = vpop.f32.mrf.mxu1 }
0x167b   :  { %3134 = vmatmul.mubr.msk.f32.vlgmr.msra.gmra.mxu1 %vm334_vm5, %v2080_v7  ;;  %3101 = vmatpush3.msra.mxu0 %v2211_v39 }
0x167c   :  { %3136 = vmatprep.subr.mxu0 %v3262_v10  ;;  %v3087_v9 = vpop.f32.mrf.mxu1 }
0x167e   :  { %v2159_v57 = vpop.f32.mrf.mxu1 }
0x1680   :  { %v3090_v12 = vpop.f32.mrf.mxu1 }
0x1682   :  { %v2169_v13 = vpop.f32.mrf.mxu1 }
0x172c   :  { %v3064_v45 = vpop.f32.mrf.mxu0 }
0x172d   :  { %v2155_v16 = vadd.f32 %v3084_v55, %v3064_v45  ;;  %v2692_v45 = vld [vmem:[%s4096_s16] ss:$0 sm:$0xff] }
0x172e   :  { %v2039_v56 = vpop.f32.mrf.mxu0 }
0x172f   :  { %v2150_v27 = vadd.f32 %v2149_v41, %v2039_v56  ;;  %v3093_v52 = vpop.f32.mrf.mxu1  ;;  %v2196_v31 = vadd.f32 %v2679_v22, %v2155_v16 }
0x1730   :  { %v3067_v37 = vpop.f32.mrf.mxu0 }
0x1731   :  { %v2195_v24 = vadd.f32 %v2679_v22, %v2150_v27  ;;  %v2165_v50 = vadd.f32 %v3087_v9, %v3067_v37  ;;  %v2179_v42 = vpop.f32.mrf.mxu1  ;;  %v2204_v29 = vmax.f32 %v2196_v31, 0.0 }
0x1732   :  { %v2049_v47 = vpop.f32.mrf.mxu0 }
0x1733   :  { %v2203_v46 = vmax.f32 %v2195_v24, 0.0  ;;  %v2160_v19 = vadd.f32 %v2159_v57, %v2049_v47  ;;  %v2433_v25 = vpop.f32.mrf.mxu1  ;;  %v2198_v8 = vadd.f32 %v2679_v22, %v2165_v50 }
0x1734   :  { %v3070_v32 = vpop.f32.mrf.mxu0 }
0x1735   :  { %v2197_v14 = vadd.f32 %v2679_v22, %v2160_v19  ;;  %v2175_v15 = vadd.f32 %v3090_v12, %v3070_v32  ;;  %3102 = vmatprep.mubr.msk.f32.mxu0 %vm334_vm5, %v2203_v46  ;;  %v3124_v23 = vpop.f32.mrf.mxu1  ;;  %v2206_v18 = vmax.f32 %v2198_v8, 0.0 }
0x1736   :  { %v2059_v17 = vpop.f32.mrf.mxu0  ;;  %3103 = vmatmul.mubr.msk.f32.vlgmr.msra.gmra.mxu0 %vm334_vm5, %v2204_v29 }
0x1737   :  { %v2205_v38 = vmax.f32 %v2197_v14, 0.0  ;;  %v2170_v51 = vadd.f32 %v2169_v13, %v2059_v17  ;;  %3137 = vmatpush3.msra.mxu0 %v2519_v11  ;;  %v2200_v53 = vadd.f32 %v2679_v22, %v2175_v15 }
0x1738   :  { %v3073_v20 = vpop.f32.mrf.mxu0  ;;  %3138 = vmatprep.subr.mxu0 %v3262_v10 }
0x1739   :  { %v2199_v28 = vadd.f32 %v2679_v22, %v2170_v51  ;;  %v2185_v59 = vadd.f32 %v3093_v52, %v3073_v20  ;;  %3105 = vmatprep.mubr.msk.f32.mxu0 %vm334_vm5, %v2205_v38  ;;  %3139 = vmatpush3.msra.mxu0 %v2518_v34  ;;  %v2208_v40 = vmax.f32 %v2200_v53, 0.0 }
0x173a   :  { %v2069_v60 = vpop.f32.mrf.mxu0  ;;  %3106 = vmatmul.mubr.msk.f32.gmra.mxu0 %vm334_vm5, %v2206_v18  ;;  %3140 = vmatprep.subr.mxu0 %v3262_v10 }
0x173b   :  { %v2207_v61 = vmax.f32 %v2199_v28, 0.0  ;;  %v2180_v62 = vadd.f32 %v2179_v42, %v2069_v60  ;;  %v2503_v26 = vpop.f32.mrf.mxu1  ;;  %3141 = vmatpush3.msra.mxu0 %v2517_v58  ;;  %v2202_v63 = vadd.f32 %v2679_v22, %v2185_v59 }
0x173c   :  { %v2504_v0 = vadd.f32 %v2503_v26, %v2433_v25  ;;  %3142 = vmatprep.subr.mxu0 %v3262_v10 }
0x173d   :  { %v2201_v1 = vadd.f32 %v2679_v22, %v2180_v62  ;;  %v3135_v2 = vpop.f32.mrf.mxu1  ;;  %3108 = vmatprep.mubr.msk.f32.mxu0 %vm334_vm5, %v2207_v61  ;;  %3143 = vmatpush3.msra.mxu0 %v2516_v21  ;;  %v2210_v4 = vmax.f32 %v2202_v63, 0.0 }
0x173e   :  { %3109 = vmatmul.mubr.msk.f32.gmra.mxu0 %vm334_vm5, %v2208_v40  ;;  %v2514_v5 = vadd.f32 %v2691_v49, %v2504_v0 }
0x173f   :  { %v2209_v3 = vmax.f32 %v2201_v1, 0.0 }
0x1740   :  { %v2515_v36 = vmax.f32 %v2514_v5, 0.0 }
0x1741   :  { %3111 = vmatprep.mubr.msk.f32.mxu0 %vm334_vm5, %v2209_v3 }
0x1742   :  { %3112 = vmatmul.mubr.msk.f32.gmra.mxu0 %vm334_vm5, %v2210_v4 }
0x1743   :  { %3144 = vmatprep.mubr.msk.f32.mxu0 %vm3263_vm1, %v3262_v10 }
0x1746   :  { %3145 = vmatmul.mubr.msk.f32.vlgmr.msra.gmra.mxu0 %vm334_vm5, %v2515_v36 }
0x17f6   :  { %v3104_v48 = vpop.f32.mrf.mxu0 }
0x17f7   :  { %v2318_v54 = vadd.f32 %v3104_v48, %v2680_v6 }
0x17f8   :  { %v2312_v7 = vpop.f32.mrf.mxu0 }
0x17f9   :  { %2352 = vst [vmem:[%s4095_s17 + $0x8] sm:$0xff] %v2318_v54  ;;  %v2313_v44 = vadd.f32 %v2680_v6, %v2312_v7 }
0x17fa   :  { %v3107_v33 = vpop.f32.mrf.mxu0 }
0x17fb   :  { %2351 = vst [vmem:[%s4095_s17] sm:$0xff] %v2313_v44  ;;  %v2328_v10 = vadd.f32 %v3107_v33, %v2680_v6 }
0x17fc   :  { %v2322_v35 = vpop.f32.mrf.mxu0 }
0x17fd   :  { %2354 = vst [vmem:[%s4095_s17 + $0x18] sm:$0xff] %v2328_v10  ;;  %v2323_v30 = vadd.f32 %v2680_v6, %v2322_v35 }
0x17fe   :  { %v3110_v43 = vpop.f32.mrf.mxu0 }
0x17ff   :  { %2353 = vst [vmem:[%s4095_s17 + $0x10] sm:$0xff] %v2323_v30  ;;  %v2338_v39 = vadd.f32 %v3110_v43, %v2680_v6 }
0x1800   :  { %v2332_v55 = vpop.f32.mrf.mxu0 }
0x1801   :  { %2356 = vst [vmem:[%s4095_s17 + $0x28] sm:$0xff] %v2338_v39  ;;  %v2333_v41 = vadd.f32 %v2680_v6, %v2332_v55 }
0x1802   :  { %v3113_v9 = vpop.f32.mrf.mxu0 }
0x1803   :  { %2355 = vst [vmem:[%s4095_s17 + $0x20] sm:$0xff] %v2333_v41  ;;  %v2348_v57 = vadd.f32 %v3113_v9, %v2680_v6 }
0x1804   :  { %v2342_v12 = vpop.f32.mrf.mxu0 }
0x1805   :  { %2358 = vst [vmem:[%s4095_s17 + $0x38] sm:$0xff] %v2348_v57  ;;  %v2343_v13 = vadd.f32 %v2680_v6, %v2342_v12 }
0x1806   :  { %v2596_v16 = vpop.f32.mrf.mxu0 }
0x1807   :  { %2357 = vst [vmem:[%s4095_s17 + $0x30] sm:$0xff] %v2343_v13  ;;  %v2597_v22 = vadd.f32 %v2692_v45, %v2596_v16 }
0x1808   :  { %v3146_v56 = vpop.f32.mrf.mxu0 }
0x1809   :  { %v2694_v27 = vmul.f32 -1.442695, %v2597_v22 }
0x180b   :  { %3252 = vpow2.f32 %v2694_v27 }
0x1818   :  { %v3253_v52 = vpop.eup %3252 }
0x1819   :  { %v2603_v31 = vadd.f32 1.0, %v3253_v52 }
0x181b   :  { %3254 = vrcp.f32 %v2603_v31 }
0x1828   :  { %v3255_v37 = vpop.eup %3254 }
0x1829   :  { %2606 = vst [vmem:[%s4097_s18] sm:$0xff] %v3255_v37 }

</bundles_post_ra>
